<compile_context>
chip_gen: v6e
topology: v6e:2x2x1
jax: 0.10.0
libtpu: 0.0.40
codegen_flags: <defaults>
</compile_context>

<pallas_src>
import jax
import jax.numpy as jnp
from jax.experimental import pallas as pl
from jax.experimental.pallas import tpu as pltpu


# ----------------------------- Pallas kernel ------------------------------- #
def _conv3x3_bias_relu_kernel(x_ref, w_ref, b_ref, o_ref, xpad_ref, stk_ref):
    """Fused zero-pad + 3x3 SAME conv + bias + ReLU over the whole batch.

    x_ref:    (N, Cin, H, W)   f32  raw NCHW input block
    w_ref:    (Cout, 9*Cin)    bf16 tap-major folded conv weight
    b_ref:    (Cout, 1)        f32  bias
    o_ref:    (N, Cout, H*W)   f32  compact output (free reshape -> NCHW)
    xpad_ref: (N, Cin, Lpad)   bf16 scratch: zero-padded image, spatial dims
                                    flattened (row stride = W + 2)
    stk_ref:  (9*Cin, N*Ppad)  bf16 scratch: stacked tap RHS, batch folded
                                    into the lane axis
    """
    N, Cin, H, W = x_ref.shape
    Wp = W + 2
    P = H * Wp                        # strided spatial extent per image
    Pp = stk_ref.shape[1] // N        # lane-aligned per-image extent

    # ---- fused zero-pad + bf16 cast into the flattened padded scratch -----
    xpad_ref[...] = jnp.zeros_like(xpad_ref)
    stk_ref[...] = jnp.zeros_like(stk_ref)
    xb = x_ref[...].astype(jnp.bfloat16)                        # (N, Cin, H, W)
    for h in range(H):
        base = (h + 1) * Wp + 1
        xpad_ref[:, :, base:base + W] = xb[:, :, h, :]

    # ---- stack the 9 lane-shifted taps; fold the batch into the lane axis --
    xp = xpad_ref[...]                                          # (N, Cin, Lpad)
    for n in range(N):
        for t in range(9):
            off = (t // 3) * Wp + (t % 3)                       # static shift
            stk_ref[t * Cin:(t + 1) * Cin, n * Pp:n * Pp + P] = (
                xp[n, :, off:off + P])

    # ---- one 36-deep MXU contraction, f32 accumulation, fused epilogue -----
    acc = jnp.dot(w_ref[...], stk_ref[...],
                  preferred_element_type=jnp.float32)           # (Cout, N*Pp)
    acc = jnp.maximum(acc + b_ref[...], 0.0)

    # ---- compact stores: drop the 2 junk columns per row while writing -----
    for n in range(N):
        for h in range(H):
            src = n * Pp + h * Wp
            o_ref[n, :, h * W:(h + 1) * W] = (
                acc[:, src:src + W].astype(o_ref.dtype))


def conv3x3_relu_pallas(x_nchw, w2, b2):
    """x_nchw: (N,Cin,H,W) f32, w2: (Cout,9*Cin) bf16, b2: (Cout,1) f32."""
    N, Cin, H, W = x_nchw.shape
    Cout = w2.shape[0]
    Wp = W + 2
    # padded-flattened length; +2 headroom for the max tap shift, lane-rounded
    Lpad = ((H + 2) * Wp + 2 + 127) // 128 * 128
    Pp = (H * Wp + 127) // 128 * 128          # lane-aligned per-image extent

    # NOTE: all block shapes equal the full array dims, so the (8,128) rule is
    # trivially satisfied; re-check if a subclass with big Cin/Cout gets tiled.
    return pl.pallas_call(
        _conv3x3_bias_relu_kernel,
        out_shape=jax.ShapeDtypeStruct((N, Cout, H * W), jnp.float32),
        grid=(1,),                            # whole batch in a single step
        in_specs=[
            pl.BlockSpec((N, Cin, H, W), lambda i: (0, 0, 0, 0)),
            pl.BlockSpec((Cout, 9 * Cin), lambda i: (0, 0)),
            pl.BlockSpec((Cout, 1), lambda i: (0, 0)),
        ],
        out_specs=pl.BlockSpec((N, Cout, H * W), lambda i: (0, 0, 0)),
        scratch_shapes=[
            pltpu.VMEM((N, Cin, Lpad), jnp.bfloat16),
            pltpu.VMEM((9 * Cin, N * Pp), jnp.bfloat16),
        ],
        compiler_params=pltpu.CompilerParams(
            dimension_semantics=("arbitrary",)),
    )(x_nchw, w2, b2)


# ------------------------------ JAX glue ------------------------------------ #
def base_block_forward(x_nchw, conv_w, conv_b):
    """Forward of BaseBlock's Sequential(Conv2d(Cin,Cout,3,pad=1), ReLU()), NCHW."""
    N, Cin, H, W = x_nchw.shape
    Cout = conv_w.shape[0]
    # tap-major folded weight: column index = (kh*3 + kw)*Cin + cin
    w2 = conv_w.transpose(0, 2, 3, 1).reshape(Cout, 9 * Cin).astype(jnp.bfloat16)
    b2 = conv_b.reshape(Cout, 1).astype(jnp.float32)
    out = conv3x3_relu_pallas(x_nchw, w2, b2)          # (N, Cout, H*W) f32
    # contiguous reshape -> NCHW: metadata only, no extra HBM pass
    return out.reshape(N, Cout, H, W)


# ------------------------------ reference ----------------------------------- #
def reference_forward(x_nchw, conv_w, conv_b):
    y = jax.lax.conv_general_dilated(
        x_nchw, conv_w, window_strides=(1, 1), padding="SAME",
        dimension_numbers=("NCHW", "OIHW", "NCHW"),
        precision=jax.lax.Precision.HIGHEST)
    y = y + conv_b.reshape(1, -1, 1, 1)
    return jnp.maximum(y, 0.0)


if __name__ == "__main__":
    key = jax.random.PRNGKey(0)
    kx, kw, kb = jax.random.split(key, 3)

    N, Cin, H, W = 2, 4, 16, 16
    Cout, KH, KW = 8, 3, 3

    x = jax.random.normal(kx, (N, Cin, H, W), dtype=jnp.float32)
    # deterministic parameter init (synthetic, not a checkpoint)
    conv_w = jax.random.normal(kw, (Cout, Cin, KH, KW), dtype=jnp.float32) * 0.1
    conv_b = jax.random.normal(kb, (Cout,), dtype=jnp.float32) * 0.1

    fwd = jax.jit(base_block_forward)
    out = jax.block_until_ready(fwd(x, conv_w, conv_b))
    assert out.shape == (N, Cout, H, W)

    # Kernel multiplies in bf16 (f32 accumulation), so compare against an exact
    # f32 reference fed the same bf16-rounded inputs (bias stays f32 in both).
    x_r = x.astype(jnp.bfloat16).astype(jnp.float32)
    w_r = conv_w.astype(jnp.bfloat16).astype(jnp.float32)
    ref = reference_forward(x_r, w_r, conv_b)
    assert jnp.allclose(out, ref, atol=2e-3, rtol=2e-3), "mismatch vs reference"

    print("KERNEL_OK")
</pallas_src>

<mosaic_0001>
module attributes {stable_mosaic.version = 11 : i64} {
  func.func @_conv3x3_bias_relu_kernel(%arg0: i32, %arg1: memref<2x4x16x16xf32, #tpu.memory_space<vmem>>, %arg2: memref<8x36xbf16, #tpu.memory_space<vmem>>, %arg3: memref<8x1xf32, #tpu.memory_space<vmem>>, %arg4: memref<2x8x256xf32, #tpu.memory_space<vmem>>, %arg5: memref<2x4x384xbf16, #tpu.memory_space<vmem>>, %arg6: memref<36x768xbf16, #tpu.memory_space<vmem>>) attributes {dimension_semantics = [#tpu.dimension_semantics<arbitrary>], iteration_bounds = array<i64: 1>, scalar_prefetch = 0 : i64, scratch_operands = 2 : i64, tpu.core_type = #tpu.core_type<tc>, window_params = [{pipeline_mode = #tpu.pipeline_mode<synchronous>, transform_indices = @transform_0, window_bounds = array<i64: 2, 4, 16, 16>}, {pipeline_mode = #tpu.pipeline_mode<synchronous>, transform_indices = @transform_1, window_bounds = array<i64: 8, 36>}, {pipeline_mode = #tpu.pipeline_mode<synchronous>, transform_indices = @transform_2, window_bounds = array<i64: 8, 1>}, {pipeline_mode = #tpu.pipeline_mode<synchronous>, transform_indices = @transform_3, window_bounds = array<i64: 2, 8, 256>}]} {
    %cst = arith.constant 0.000000e+00 : bf16
    %0 = vector.broadcast %cst : bf16 to vector<2x4x384xbf16>
    %c0 = arith.constant 0 : index
    %c0_0 = arith.constant 0 : index
    %c0_1 = arith.constant 0 : index
    %1 = vector.load %arg5[%c0, %c0_0, %c0_1] : memref<2x4x384xbf16, #tpu.memory_space<vmem>>, vector<2x4x384xbf16>
    tpu.vector_store %arg5[%c0, %c0_0, %c0_1], %0 {strides = array<i32>} : memref<2x4x384xbf16, #tpu.memory_space<vmem>>, vector<2x4x384xbf16>,
    %cst_2 = arith.constant 0.000000e+00 : bf16
    %2 = vector.broadcast %cst_2 : bf16 to vector<36x768xbf16>
    %c0_3 = arith.constant 0 : index
    %c0_4 = arith.constant 0 : index
    %3 = vector.load %arg6[%c0_3, %c0_4] : memref<36x768xbf16, #tpu.memory_space<vmem>>, vector<36x768xbf16>
    tpu.vector_store %arg6[%c0_3, %c0_4], %2 {strides = array<i32>} : memref<36x768xbf16, #tpu.memory_space<vmem>>, vector<36x768xbf16>,
    %c0_5 = arith.constant 0 : index
    %c0_6 = arith.constant 0 : index
    %c0_7 = arith.constant 0 : index
    %c0_8 = arith.constant 0 : index
    %4 = vector.load %arg1[%c0_5, %c0_6, %c0_7, %c0_8] : memref<2x4x16x16xf32, #tpu.memory_space<vmem>>, vector<2x4x16x16xf32>
    %5 = arith.truncf %4 : vector<2x4x16x16xf32> to vector<2x4x16x16xbf16>
    %6 = vector.extract_strided_slice %5 {offsets = [0, 0, 0, 0], sizes = [2, 4, 1, 16], strides = [1, 1, 1, 1]} : vector<2x4x16x16xbf16> to vector<2x4x1x16xbf16>
    %7 = vector.shape_cast %6 : vector<2x4x1x16xbf16> to vector<2x4x16xbf16>
    %c0_9 = arith.constant 0 : index
    %c0_10 = arith.constant 0 : index
    %c19 = arith.constant 19 : index
    %8 = vector.load %arg5[%c0_9, %c0_10, %c19] : memref<2x4x384xbf16, #tpu.memory_space<vmem>>, vector<2x4x16xbf16>
    tpu.vector_store %arg5[%c0_9, %c0_10, %c19], %7 {strides = array<i32>} : memref<2x4x384xbf16, #tpu.memory_space<vmem>>, vector<2x4x16xbf16>,
    %9 = vector.extract_strided_slice %5 {offsets = [0, 0, 1, 0], sizes = [2, 4, 1, 16], strides = [1, 1, 1, 1]} : vector<2x4x16x16xbf16> to vector<2x4x1x16xbf16>
    %10 = vector.shape_cast %9 : vector<2x4x1x16xbf16> to vector<2x4x16xbf16>
    %c0_11 = arith.constant 0 : index
    %c0_12 = arith.constant 0 : index
    %c37 = arith.constant 37 : index
    %11 = vector.load %arg5[%c0_11, %c0_12, %c37] : memref<2x4x384xbf16, #tpu.memory_space<vmem>>, vector<2x4x16xbf16>
    tpu.vector_store %arg5[%c0_11, %c0_12, %c37], %10 {strides = array<i32>} : memref<2x4x384xbf16, #tpu.memory_space<vmem>>, vector<2x4x16xbf16>,
    %12 = vector.extract_strided_slice %5 {offsets = [0, 0, 2, 0], sizes = [2, 4, 1, 16], strides = [1, 1, 1, 1]} : vector<2x4x16x16xbf16> to vector<2x4x1x16xbf16>
    %13 = vector.shape_cast %12 : vector<2x4x1x16xbf16> to vector<2x4x16xbf16>
    %c0_13 = arith.constant 0 : index
    %c0_14 = arith.constant 0 : index
    %c55 = arith.constant 55 : index
    %14 = vector.load %arg5[%c0_13, %c0_14, %c55] : memref<2x4x384xbf16, #tpu.memory_space<vmem>>, vector<2x4x16xbf16>
    tpu.vector_store %arg5[%c0_13, %c0_14, %c55], %13 {strides = array<i32>} : memref<2x4x384xbf16, #tpu.memory_space<vmem>>, vector<2x4x16xbf16>,
    %15 = vector.extract_strided_slice %5 {offsets = [0, 0, 3, 0], sizes = [2, 4, 1, 16], strides = [1, 1, 1, 1]} : vector<2x4x16x16xbf16> to vector<2x4x1x16xbf16>
    %16 = vector.shape_cast %15 : vector<2x4x1x16xbf16> to vector<2x4x16xbf16>
    %c0_15 = arith.constant 0 : index
    %c0_16 = arith.constant 0 : index
    %c73 = arith.constant 73 : index
    %17 = vector.load %arg5[%c0_15, %c0_16, %c73] : memref<2x4x384xbf16, #tpu.memory_space<vmem>>, vector<2x4x16xbf16>
    tpu.vector_store %arg5[%c0_15, %c0_16, %c73], %16 {strides = array<i32>} : memref<2x4x384xbf16, #tpu.memory_space<vmem>>, vector<2x4x16xbf16>,
    %18 = vector.extract_strided_slice %5 {offsets = [0, 0, 4, 0], sizes = [2, 4, 1, 16], strides = [1, 1, 1, 1]} : vector<2x4x16x16xbf16> to vector<2x4x1x16xbf16>
    %19 = vector.shape_cast %18 : vector<2x4x1x16xbf16> to vector<2x4x16xbf16>
    %c0_17 = arith.constant 0 : index
    %c0_18 = arith.constant 0 : index
    %c91 = arith.constant 91 : index
    %20 = vector.load %arg5[%c0_17, %c0_18, %c91] : memref<2x4x384xbf16, #tpu.memory_space<vmem>>, vector<2x4x16xbf16>
    tpu.vector_store %arg5[%c0_17, %c0_18, %c91], %19 {strides = array<i32>} : memref<2x4x384xbf16, #tpu.memory_space<vmem>>, vector<2x4x16xbf16>,
    %21 = vector.extract_strided_slice %5 {offsets = [0, 0, 5, 0], sizes = [2, 4, 1, 16], strides = [1, 1, 1, 1]} : vector<2x4x16x16xbf16> to vector<2x4x1x16xbf16>
    %22 = vector.shape_cast %21 : vector<2x4x1x16xbf16> to vector<2x4x16xbf16>
    %c0_19 = arith.constant 0 : index
    %c0_20 = arith.constant 0 : index
    %c109 = arith.constant 109 : index
    %23 = vector.load %arg5[%c0_19, %c0_20, %c109] : memref<2x4x384xbf16, #tpu.memory_space<vmem>>, vector<2x4x16xbf16>
    tpu.vector_store %arg5[%c0_19, %c0_20, %c109], %22 {strides = array<i32>} : memref<2x4x384xbf16, #tpu.memory_space<vmem>>, vector<2x4x16xbf16>,
    %24 = vector.extract_strided_slice %5 {offsets = [0, 0, 6, 0], sizes = [2, 4, 1, 16], strides = [1, 1, 1, 1]} : vector<2x4x16x16xbf16> to vector<2x4x1x16xbf16>
    %25 = vector.shape_cast %24 : vector<2x4x1x16xbf16> to vector<2x4x16xbf16>
    %c0_21 = arith.constant 0 : index
    %c0_22 = arith.constant 0 : index
    %c127 = arith.constant 127 : index
    %26 = vector.load %arg5[%c0_21, %c0_22, %c127] : memref<2x4x384xbf16, #tpu.memory_space<vmem>>, vector<2x4x16xbf16>
    tpu.vector_store %arg5[%c0_21, %c0_22, %c127], %25 {strides = array<i32>} : memref<2x4x384xbf16, #tpu.memory_space<vmem>>, vector<2x4x16xbf16>,
    %27 = vector.extract_strided_slice %5 {offsets = [0, 0, 7, 0], sizes = [2, 4, 1, 16], strides = [1, 1, 1, 1]} : vector<2x4x16x16xbf16> to vector<2x4x1x16xbf16>
    %28 = vector.shape_cast %27 : vector<2x4x1x16xbf16> to vector<2x4x16xbf16>
    %c0_23 = arith.constant 0 : index
    %c0_24 = arith.constant 0 : index
    %c145 = arith.constant 145 : index
    %29 = vector.load %arg5[%c0_23, %c0_24, %c145] : memref<2x4x384xbf16, #tpu.memory_space<vmem>>, vector<2x4x16xbf16>
    tpu.vector_store %arg5[%c0_23, %c0_24, %c145], %28 {strides = array<i32>} : memref<2x4x384xbf16, #tpu.memory_space<vmem>>, vector<2x4x16xbf16>,
    %30 = vector.extract_strided_slice %5 {offsets = [0, 0, 8, 0], sizes = [2, 4, 1, 16], strides = [1, 1, 1, 1]} : vector<2x4x16x16xbf16> to vector<2x4x1x16xbf16>
    %31 = vector.shape_cast %30 : vector<2x4x1x16xbf16> to vector<2x4x16xbf16>
    %c0_25 = arith.constant 0 : index
    %c0_26 = arith.constant 0 : index
    %c163 = arith.constant 163 : index
    %32 = vector.load %arg5[%c0_25, %c0_26, %c163] : memref<2x4x384xbf16, #tpu.memory_space<vmem>>, vector<2x4x16xbf16>
    tpu.vector_store %arg5[%c0_25, %c0_26, %c163], %31 {strides = array<i32>} : memref<2x4x384xbf16, #tpu.memory_space<vmem>>, vector<2x4x16xbf16>,
    %33 = vector.extract_strided_slice %5 {offsets = [0, 0, 9, 0], sizes = [2, 4, 1, 16], strides = [1, 1, 1, 1]} : vector<2x4x16x16xbf16> to vector<2x4x1x16xbf16>
    %34 = vector.shape_cast %33 : vector<2x4x1x16xbf16> to vector<2x4x16xbf16>
    %c0_27 = arith.constant 0 : index
    %c0_28 = arith.constant 0 : index
    %c181 = arith.constant 181 : index
    %35 = vector.load %arg5[%c0_27, %c0_28, %c181] : memref<2x4x384xbf16, #tpu.memory_space<vmem>>, vector<2x4x16xbf16>
    tpu.vector_store %arg5[%c0_27, %c0_28, %c181], %34 {strides = array<i32>} : memref<2x4x384xbf16, #tpu.memory_space<vmem>>, vector<2x4x16xbf16>,
    %36 = vector.extract_strided_slice %5 {offsets = [0, 0, 10, 0], sizes = [2, 4, 1, 16], strides = [1, 1, 1, 1]} : vector<2x4x16x16xbf16> to vector<2x4x1x16xbf16>
    %37 = vector.shape_cast %36 : vector<2x4x1x16xbf16> to vector<2x4x16xbf16>
    %c0_29 = arith.constant 0 : index
    %c0_30 = arith.constant 0 : index
    %c199 = arith.constant 199 : index
    %38 = vector.load %arg5[%c0_29, %c0_30, %c199] : memref<2x4x384xbf16, #tpu.memory_space<vmem>>, vector<2x4x16xbf16>
    tpu.vector_store %arg5[%c0_29, %c0_30, %c199], %37 {strides = array<i32>} : memref<2x4x384xbf16, #tpu.memory_space<vmem>>, vector<2x4x16xbf16>,
    %39 = vector.extract_strided_slice %5 {offsets = [0, 0, 11, 0], sizes = [2, 4, 1, 16], strides = [1, 1, 1, 1]} : vector<2x4x16x16xbf16> to vector<2x4x1x16xbf16>
    %40 = vector.shape_cast %39 : vector<2x4x1x16xbf16> to vector<2x4x16xbf16>
    %c0_31 = arith.constant 0 : index
    %c0_32 = arith.constant 0 : index
    %c217 = arith.constant 217 : index
    %41 = vector.load %arg5[%c0_31, %c0_32, %c217] : memref<2x4x384xbf16, #tpu.memory_space<vmem>>, vector<2x4x16xbf16>
    tpu.vector_store %arg5[%c0_31, %c0_32, %c217], %40 {strides = array<i32>} : memref<2x4x384xbf16, #tpu.memory_space<vmem>>, vector<2x4x16xbf16>,
    %42 = vector.extract_strided_slice %5 {offsets = [0, 0, 12, 0], sizes = [2, 4, 1, 16], strides = [1, 1, 1, 1]} : vector<2x4x16x16xbf16> to vector<2x4x1x16xbf16>
    %43 = vector.shape_cast %42 : vector<2x4x1x16xbf16> to vector<2x4x16xbf16>
    %c0_33 = arith.constant 0 : index
    %c0_34 = arith.constant 0 : index
    %c235 = arith.constant 235 : index
    %44 = vector.load %arg5[%c0_33, %c0_34, %c235] : memref<2x4x384xbf16, #tpu.memory_space<vmem>>, vector<2x4x16xbf16>
    tpu.vector_store %arg5[%c0_33, %c0_34, %c235], %43 {strides = array<i32>} : memref<2x4x384xbf16, #tpu.memory_space<vmem>>, vector<2x4x16xbf16>,
    %45 = vector.extract_strided_slice %5 {offsets = [0, 0, 13, 0], sizes = [2, 4, 1, 16], strides = [1, 1, 1, 1]} : vector<2x4x16x16xbf16> to vector<2x4x1x16xbf16>
    %46 = vector.shape_cast %45 : vector<2x4x1x16xbf16> to vector<2x4x16xbf16>
    %c0_35 = arith.constant 0 : index
    %c0_36 = arith.constant 0 : index
    %c253 = arith.constant 253 : index
    %47 = vector.load %arg5[%c0_35, %c0_36, %c253] : memref<2x4x384xbf16, #tpu.memory_space<vmem>>, vector<2x4x16xbf16>
    tpu.vector_store %arg5[%c0_35, %c0_36, %c253], %46 {strides = array<i32>} : memref<2x4x384xbf16, #tpu.memory_space<vmem>>, vector<2x4x16xbf16>,
    %48 = vector.extract_strided_slice %5 {offsets = [0, 0, 14, 0], sizes = [2, 4, 1, 16], strides = [1, 1, 1, 1]} : vector<2x4x16x16xbf16> to vector<2x4x1x16xbf16>
    %49 = vector.shape_cast %48 : vector<2x4x1x16xbf16> to vector<2x4x16xbf16>
    %c0_37 = arith.constant 0 : index
    %c0_38 = arith.constant 0 : index
    %c271 = arith.constant 271 : index
    %50 = vector.load %arg5[%c0_37, %c0_38, %c271] : memref<2x4x384xbf16, #tpu.memory_space<vmem>>, vector<2x4x16xbf16>
    tpu.vector_store %arg5[%c0_37, %c0_38, %c271], %49 {strides = array<i32>} : memref<2x4x384xbf16, #tpu.memory_space<vmem>>, vector<2x4x16xbf16>,
    %51 = vector.extract_strided_slice %5 {offsets = [0, 0, 15, 0], sizes = [2, 4, 1, 16], strides = [1, 1, 1, 1]} : vector<2x4x16x16xbf16> to vector<2x4x1x16xbf16>
    %52 = vector.shape_cast %51 : vector<2x4x1x16xbf16> to vector<2x4x16xbf16>
    %c0_39 = arith.constant 0 : index
    %c0_40 = arith.constant 0 : index
    %c289 = arith.constant 289 : index
    %53 = vector.load %arg5[%c0_39, %c0_40, %c289] : memref<2x4x384xbf16, #tpu.memory_space<vmem>>, vector<2x4x16xbf16>
    tpu.vector_store %arg5[%c0_39, %c0_40, %c289], %52 {strides = array<i32>} : memref<2x4x384xbf16, #tpu.memory_space<vmem>>, vector<2x4x16xbf16>,
    %c0_41 = arith.constant 0 : index
    %c0_42 = arith.constant 0 : index
    %c0_43 = arith.constant 0 : index
    %54 = vector.load %arg5[%c0_41, %c0_42, %c0_43] : memref<2x4x384xbf16, #tpu.memory_space<vmem>>, vector<2x4x384xbf16>
    %55 = vector.extract_strided_slice %54 {offsets = [0, 0, 0], sizes = [1, 4, 288], strides = [1, 1, 1]} : vector<2x4x384xbf16> to vector<1x4x288xbf16>
    %56 = vector.shape_cast %55 : vector<1x4x288xbf16> to vector<4x288xbf16>
    %c0_44 = arith.constant 0 : index
    %c0_45 = arith.constant 0 : index
    %57 = vector.load %arg6[%c0_44, %c0_45] : memref<36x768xbf16, #tpu.memory_space<vmem>>, vector<4x288xbf16>
    tpu.vector_store %arg6[%c0_44, %c0_45], %56 {strides = array<i32>} : memref<36x768xbf16, #tpu.memory_space<vmem>>, vector<4x288xbf16>,
    %58 = vector.extract_strided_slice %54 {offsets = [0, 0, 1], sizes = [1, 4, 288], strides = [1, 1, 1]} : vector<2x4x384xbf16> to vector<1x4x288xbf16>
    %59 = vector.shape_cast %58 : vector<1x4x288xbf16> to vector<4x288xbf16>
    %c4 = arith.constant 4 : index
    %c0_46 = arith.constant 0 : index
    %60 = vector.load %arg6[%c4, %c0_46] : memref<36x768xbf16, #tpu.memory_space<vmem>>, vector<4x288xbf16>
    tpu.vector_store %arg6[%c4, %c0_46], %59 {strides = array<i32>} : memref<36x768xbf16, #tpu.memory_space<vmem>>, vector<4x288xbf16>,
    %61 = vector.extract_strided_slice %54 {offsets = [0, 0, 2], sizes = [1, 4, 288], strides = [1, 1, 1]} : vector<2x4x384xbf16> to vector<1x4x288xbf16>
    %62 = vector.shape_cast %61 : vector<1x4x288xbf16> to vector<4x288xbf16>
    %c8 = arith.constant 8 : index
    %c0_47 = arith.constant 0 : index
    %63 = vector.load %arg6[%c8, %c0_47] : memref<36x768xbf16, #tpu.memory_space<vmem>>, vector<4x288xbf16>
    tpu.vector_store %arg6[%c8, %c0_47], %62 {strides = array<i32>} : memref<36x768xbf16, #tpu.memory_space<vmem>>, vector<4x288xbf16>,
    %64 = vector.extract_strided_slice %54 {offsets = [0, 0, 18], sizes = [1, 4, 288], strides = [1, 1, 1]} : vector<2x4x384xbf16> to vector<1x4x288xbf16>
    %65 = vector.shape_cast %64 : vector<1x4x288xbf16> to vector<4x288xbf16>
    %c12 = arith.constant 12 : index
    %c0_48 = arith.constant 0 : index
    %66 = vector.load %arg6[%c12, %c0_48] : memref<36x768xbf16, #tpu.memory_space<vmem>>, vector<4x288xbf16>
    tpu.vector_store %arg6[%c12, %c0_48], %65 {strides = array<i32>} : memref<36x768xbf16, #tpu.memory_space<vmem>>, vector<4x288xbf16>,
    %67 = vector.extract_strided_slice %54 {offsets = [0, 0, 19], sizes = [1, 4, 288], strides = [1, 1, 1]} : vector<2x4x384xbf16> to vector<1x4x288xbf16>
    %68 = vector.shape_cast %67 : vector<1x4x288xbf16> to vector<4x288xbf16>
    %c16 = arith.constant 16 : index
    %c0_49 = arith.constant 0 : index
    %69 = vector.load %arg6[%c16, %c0_49] : memref<36x768xbf16, #tpu.memory_space<vmem>>, vector<4x288xbf16>
    tpu.vector_store %arg6[%c16, %c0_49], %68 {strides = array<i32>} : memref<36x768xbf16, #tpu.memory_space<vmem>>, vector<4x288xbf16>,
    %70 = vector.extract_strided_slice %54 {offsets = [0, 0, 20], sizes = [1, 4, 288], strides = [1, 1, 1]} : vector<2x4x384xbf16> to vector<1x4x288xbf16>
    %71 = vector.shape_cast %70 : vector<1x4x288xbf16> to vector<4x288xbf16>
    %c20 = arith.constant 20 : index
    %c0_50 = arith.constant 0 : index
    %72 = vector.load %arg6[%c20, %c0_50] : memref<36x768xbf16, #tpu.memory_space<vmem>>, vector<4x288xbf16>
    tpu.vector_store %arg6[%c20, %c0_50], %71 {strides = array<i32>} : memref<36x768xbf16, #tpu.memory_space<vmem>>, vector<4x288xbf16>,
    %73 = vector.extract_strided_slice %54 {offsets = [0, 0, 36], sizes = [1, 4, 288], strides = [1, 1, 1]} : vector<2x4x384xbf16> to vector<1x4x288xbf16>
    %74 = vector.shape_cast %73 : vector<1x4x288xbf16> to vector<4x288xbf16>
    %c24 = arith.constant 24 : index
    %c0_51 = arith.constant 0 : index
    %75 = vector.load %arg6[%c24, %c0_51] : memref<36x768xbf16, #tpu.memory_space<vmem>>, vector<4x288xbf16>
    tpu.vector_store %arg6[%c24, %c0_51], %74 {strides = array<i32>} : memref<36x768xbf16, #tpu.memory_space<vmem>>, vector<4x288xbf16>,
    %76 = vector.extract_strided_slice %54 {offsets = [0, 0, 37], sizes = [1, 4, 288], strides = [1, 1, 1]} : vector<2x4x384xbf16> to vector<1x4x288xbf16>
    %77 = vector.shape_cast %76 : vector<1x4x288xbf16> to vector<4x288xbf16>
    %c28 = arith.constant 28 : index
    %c0_52 = arith.constant 0 : index
    %78 = vector.load %arg6[%c28, %c0_52] : memref<36x768xbf16, #tpu.memory_space<vmem>>, vector<4x288xbf16>
    tpu.vector_store %arg6[%c28, %c0_52], %77 {strides = array<i32>} : memref<36x768xbf16, #tpu.memory_space<vmem>>, vector<4x288xbf16>,
    %79 = vector.extract_strided_slice %54 {offsets = [0, 0, 38], sizes = [1, 4, 288], strides = [1, 1, 1]} : vector<2x4x384xbf16> to vector<1x4x288xbf16>
    %80 = vector.shape_cast %79 : vector<1x4x288xbf16> to vector<4x288xbf16>
    %c32 = arith.constant 32 : index
    %c0_53 = arith.constant 0 : index
    %81 = vector.load %arg6[%c32, %c0_53] : memref<36x768xbf16, #tpu.memory_space<vmem>>, vector<4x288xbf16>
    tpu.vector_store %arg6[%c32, %c0_53], %80 {strides = array<i32>} : memref<36x768xbf16, #tpu.memory_space<vmem>>, vector<4x288xbf16>,
    %82 = vector.extract_strided_slice %54 {offsets = [1, 0, 0], sizes = [1, 4, 288], strides = [1, 1, 1]} : vector<2x4x384xbf16> to vector<1x4x288xbf16>
    %83 = vector.shape_cast %82 : vector<1x4x288xbf16> to vector<4x288xbf16>
    %c0_54 = arith.constant 0 : index
    %c384 = arith.constant 384 : index
    %84 = vector.load %arg6[%c0_54, %c384] : memref<36x768xbf16, #tpu.memory_space<vmem>>, vector<4x288xbf16>
    tpu.vector_store %arg6[%c0_54, %c384], %83 {strides = array<i32>} : memref<36x768xbf16, #tpu.memory_space<vmem>>, vector<4x288xbf16>,
    %85 = vector.extract_strided_slice %54 {offsets = [1, 0, 1], sizes = [1, 4, 288], strides = [1, 1, 1]} : vector<2x4x384xbf16> to vector<1x4x288xbf16>
    %86 = vector.shape_cast %85 : vector<1x4x288xbf16> to vector<4x288xbf16>
    %c4_55 = arith.constant 4 : index
    %c384_56 = arith.constant 384 : index
    %87 = vector.load %arg6[%c4_55, %c384_56] : memref<36x768xbf16, #tpu.memory_space<vmem>>, vector<4x288xbf16>
    tpu.vector_store %arg6[%c4_55, %c384_56], %86 {strides = array<i32>} : memref<36x768xbf16, #tpu.memory_space<vmem>>, vector<4x288xbf16>,
    %88 = vector.extract_strided_slice %54 {offsets = [1, 0, 2], sizes = [1, 4, 288], strides = [1, 1, 1]} : vector<2x4x384xbf16> to vector<1x4x288xbf16>
    %89 = vector.shape_cast %88 : vector<1x4x288xbf16> to vector<4x288xbf16>
    %c8_57 = arith.constant 8 : index
    %c384_58 = arith.constant 384 : index
    %90 = vector.load %arg6[%c8_57, %c384_58] : memref<36x768xbf16, #tpu.memory_space<vmem>>, vector<4x288xbf16>
    tpu.vector_store %arg6[%c8_57, %c384_58], %89 {strides = array<i32>} : memref<36x768xbf16, #tpu.memory_space<vmem>>, vector<4x288xbf16>,
    %91 = vector.extract_strided_slice %54 {offsets = [1, 0, 18], sizes = [1, 4, 288], strides = [1, 1, 1]} : vector<2x4x384xbf16> to vector<1x4x288xbf16>
    %92 = vector.shape_cast %91 : vector<1x4x288xbf16> to vector<4x288xbf16>
    %c12_59 = arith.constant 12 : index
    %c384_60 = arith.constant 384 : index
    %93 = vector.load %arg6[%c12_59, %c384_60] : memref<36x768xbf16, #tpu.memory_space<vmem>>, vector<4x288xbf16>
    tpu.vector_store %arg6[%c12_59, %c384_60], %92 {strides = array<i32>} : memref<36x768xbf16, #tpu.memory_space<vmem>>, vector<4x288xbf16>,
    %94 = vector.extract_strided_slice %54 {offsets = [1, 0, 19], sizes = [1, 4, 288], strides = [1, 1, 1]} : vector<2x4x384xbf16> to vector<1x4x288xbf16>
    %95 = vector.shape_cast %94 : vector<1x4x288xbf16> to vector<4x288xbf16>
    %c16_61 = arith.constant 16 : index
    %c384_62 = arith.constant 384 : index
    %96 = vector.load %arg6[%c16_61, %c384_62] : memref<36x768xbf16, #tpu.memory_space<vmem>>, vector<4x288xbf16>
    tpu.vector_store %arg6[%c16_61, %c384_62], %95 {strides = array<i32>} : memref<36x768xbf16, #tpu.memory_space<vmem>>, vector<4x288xbf16>,
    %97 = vector.extract_strided_slice %54 {offsets = [1, 0, 20], sizes = [1, 4, 288], strides = [1, 1, 1]} : vector<2x4x384xbf16> to vector<1x4x288xbf16>
    %98 = vector.shape_cast %97 : vector<1x4x288xbf16> to vector<4x288xbf16>
    %c20_63 = arith.constant 20 : index
    %c384_64 = arith.constant 384 : index
    %99 = vector.load %arg6[%c20_63, %c384_64] : memref<36x768xbf16, #tpu.memory_space<vmem>>, vector<4x288xbf16>
    tpu.vector_store %arg6[%c20_63, %c384_64], %98 {strides = array<i32>} : memref<36x768xbf16, #tpu.memory_space<vmem>>, vector<4x288xbf16>,
    %100 = vector.extract_strided_slice %54 {offsets = [1, 0, 36], sizes = [1, 4, 288], strides = [1, 1, 1]} : vector<2x4x384xbf16> to vector<1x4x288xbf16>
    %101 = vector.shape_cast %100 : vector<1x4x288xbf16> to vector<4x288xbf16>
    %c24_65 = arith.constant 24 : index
    %c384_66 = arith.constant 384 : index
    %102 = vector.load %arg6[%c24_65, %c384_66] : memref<36x768xbf16, #tpu.memory_space<vmem>>, vector<4x288xbf16>
    tpu.vector_store %arg6[%c24_65, %c384_66], %101 {strides = array<i32>} : memref<36x768xbf16, #tpu.memory_space<vmem>>, vector<4x288xbf16>,
    %103 = vector.extract_strided_slice %54 {offsets = [1, 0, 37], sizes = [1, 4, 288], strides = [1, 1, 1]} : vector<2x4x384xbf16> to vector<1x4x288xbf16>
    %104 = vector.shape_cast %103 : vector<1x4x288xbf16> to vector<4x288xbf16>
    %c28_67 = arith.constant 28 : index
    %c384_68 = arith.constant 384 : index
    %105 = vector.load %arg6[%c28_67, %c384_68] : memref<36x768xbf16, #tpu.memory_space<vmem>>, vector<4x288xbf16>
    tpu.vector_store %arg6[%c28_67, %c384_68], %104 {strides = array<i32>} : memref<36x768xbf16, #tpu.memory_space<vmem>>, vector<4x288xbf16>,
    %106 = vector.extract_strided_slice %54 {offsets = [1, 0, 38], sizes = [1, 4, 288], strides = [1, 1, 1]} : vector<2x4x384xbf16> to vector<1x4x288xbf16>
    %107 = vector.shape_cast %106 : vector<1x4x288xbf16> to vector<4x288xbf16>
    %c32_69 = arith.constant 32 : index
    %c384_70 = arith.constant 384 : index
    %108 = vector.load %arg6[%c32_69, %c384_70] : memref<36x768xbf16, #tpu.memory_space<vmem>>, vector<4x288xbf16>
    tpu.vector_store %arg6[%c32_69, %c384_70], %107 {strides = array<i32>} : memref<36x768xbf16, #tpu.memory_space<vmem>>, vector<4x288xbf16>,
    %c0_71 = arith.constant 0 : index
    %c0_72 = arith.constant 0 : index
    %109 = vector.load %arg2[%c0_71, %c0_72] : memref<8x36xbf16, #tpu.memory_space<vmem>>, vector<8x36xbf16>
    %c0_73 = arith.constant 0 : index
    %c0_74 = arith.constant 0 : index
    %110 = vector.load %arg6[%c0_73, %c0_74] : memref<36x768xbf16, #tpu.memory_space<vmem>>, vector<36x768xbf16>
    %cst_75 = arith.constant dense<0.000000e+00> : vector<8x768xf32>
    %111 = tpu.matmul %109, %110, %cst_75 {dimension_numbers = #tpu.dot_dimension_numbers<[1], [0], [0], [1], [0, 0, 1, 1], [], []>} : vector<8x36xbf16>, vector<36x768xbf16>, vector<8x768xf32> -> vector<8x768xf32>
    %c0_76 = arith.constant 0 : index
    %c0_77 = arith.constant 0 : index
    %112 = vector.load %arg3[%c0_76, %c0_77] : memref<8x1xf32, #tpu.memory_space<vmem>>, vector<8x1xf32>
    %113 = vector.broadcast %112 : vector<8x1xf32> to vector<8x768xf32>
    %114 = arith.addf %111, %113 : vector<8x768xf32>
    %cst_78 = arith.constant 0.000000e+00 : f32
    %115 = vector.broadcast %cst_78 : f32 to vector<8x768xf32>
    %116 = arith.maximumf %114, %115 : vector<8x768xf32>
    %117 = vector.extract_strided_slice %116 {offsets = [0, 0], sizes = [8, 16], strides = [1, 1]} : vector<8x768xf32> to vector<8x16xf32>
    %c0_79 = arith.constant 0 : index
    %c0_80 = arith.constant 0 : index
    %c0_81 = arith.constant 0 : index
    %118 = vector.load %arg4[%c0_79, %c0_80, %c0_81] : memref<2x8x256xf32, #tpu.memory_space<vmem>>, vector<1x8x16xf32>
    %119 = vector.shape_cast %118 : vector<1x8x16xf32> to vector<8x16xf32>
    %120 = vector.shape_cast %117 : vector<8x16xf32> to vector<1x8x16xf32>
    tpu.vector_store %arg4[%c0_79, %c0_80, %c0_81], %120 {strides = array<i32>} : memref<2x8x256xf32, #tpu.memory_space<vmem>>, vector<1x8x16xf32>,
    %121 = vector.extract_strided_slice %116 {offsets = [0, 18], sizes = [8, 16], strides = [1, 1]} : vector<8x768xf32> to vector<8x16xf32>
    %c0_82 = arith.constant 0 : index
    %c0_83 = arith.constant 0 : index
    %c16_84 = arith.constant 16 : index
    %122 = vector.load %arg4[%c0_82, %c0_83, %c16_84] : memref<2x8x256xf32, #tpu.memory_space<vmem>>, vector<1x8x16xf32>
    %123 = vector.shape_cast %122 : vector<1x8x16xf32> to vector<8x16xf32>
    %124 = vector.shape_cast %121 : vector<8x16xf32> to vector<1x8x16xf32>
    tpu.vector_store %arg4[%c0_82, %c0_83, %c16_84], %124 {strides = array<i32>} : memref<2x8x256xf32, #tpu.memory_space<vmem>>, vector<1x8x16xf32>,
    %125 = vector.extract_strided_slice %116 {offsets = [0, 36], sizes = [8, 16], strides = [1, 1]} : vector<8x768xf32> to vector<8x16xf32>
    %c0_85 = arith.constant 0 : index
    %c0_86 = arith.constant 0 : index
    %c32_87 = arith.constant 32 : index
    %126 = vector.load %arg4[%c0_85, %c0_86, %c32_87] : memref<2x8x256xf32, #tpu.memory_space<vmem>>, vector<1x8x16xf32>
    %127 = vector.shape_cast %126 : vector<1x8x16xf32> to vector<8x16xf32>
    %128 = vector.shape_cast %125 : vector<8x16xf32> to vector<1x8x16xf32>
    tpu.vector_store %arg4[%c0_85, %c0_86, %c32_87], %128 {strides = array<i32>} : memref<2x8x256xf32, #tpu.memory_space<vmem>>, vector<1x8x16xf32>,
    %129 = vector.extract_strided_slice %116 {offsets = [0, 54], sizes = [8, 16], strides = [1, 1]} : vector<8x768xf32> to vector<8x16xf32>
    %c0_88 = arith.constant 0 : index
    %c0_89 = arith.constant 0 : index
    %c48 = arith.constant 48 : index
    %130 = vector.load %arg4[%c0_88, %c0_89, %c48] : memref<2x8x256xf32, #tpu.memory_space<vmem>>, vector<1x8x16xf32>
    %131 = vector.shape_cast %130 : vector<1x8x16xf32> to vector<8x16xf32>
    %132 = vector.shape_cast %129 : vector<8x16xf32> to vector<1x8x16xf32>
    tpu.vector_store %arg4[%c0_88, %c0_89, %c48], %132 {strides = array<i32>} : memref<2x8x256xf32, #tpu.memory_space<vmem>>, vector<1x8x16xf32>,
    %133 = vector.extract_strided_slice %116 {offsets = [0, 72], sizes = [8, 16], strides = [1, 1]} : vector<8x768xf32> to vector<8x16xf32>
    %c0_90 = arith.constant 0 : index
    %c0_91 = arith.constant 0 : index
    %c64 = arith.constant 64 : index
    %134 = vector.load %arg4[%c0_90, %c0_91, %c64] : memref<2x8x256xf32, #tpu.memory_space<vmem>>, vector<1x8x16xf32>
    %135 = vector.shape_cast %134 : vector<1x8x16xf32> to vector<8x16xf32>
    %136 = vector.shape_cast %133 : vector<8x16xf32> to vector<1x8x16xf32>
    tpu.vector_store %arg4[%c0_90, %c0_91, %c64], %136 {strides = array<i32>} : memref<2x8x256xf32, #tpu.memory_space<vmem>>, vector<1x8x16xf32>,
    %137 = vector.extract_strided_slice %116 {offsets = [0, 90], sizes = [8, 16], strides = [1, 1]} : vector<8x768xf32> to vector<8x16xf32>
    %c0_92 = arith.constant 0 : index
    %c0_93 = arith.constant 0 : index
    %c80 = arith.constant 80 : index
    %138 = vector.load %arg4[%c0_92, %c0_93, %c80] : memref<2x8x256xf32, #tpu.memory_space<vmem>>, vector<1x8x16xf32>
    %139 = vector.shape_cast %138 : vector<1x8x16xf32> to vector<8x16xf32>
    %140 = vector.shape_cast %137 : vector<8x16xf32> to vector<1x8x16xf32>
    tpu.vector_store %arg4[%c0_92, %c0_93, %c80], %140 {strides = array<i32>} : memref<2x8x256xf32, #tpu.memory_space<vmem>>, vector<1x8x16xf32>,
    %141 = vector.extract_strided_slice %116 {offsets = [0, 108], sizes = [8, 16], strides = [1, 1]} : vector<8x768xf32> to vector<8x16xf32>
    %c0_94 = arith.constant 0 : index
    %c0_95 = arith.constant 0 : index
    %c96 = arith.constant 96 : index
    %142 = vector.load %arg4[%c0_94, %c0_95, %c96] : memref<2x8x256xf32, #tpu.memory_space<vmem>>, vector<1x8x16xf32>
    %143 = vector.shape_cast %142 : vector<1x8x16xf32> to vector<8x16xf32>
    %144 = vector.shape_cast %141 : vector<8x16xf32> to vector<1x8x16xf32>
    tpu.vector_store %arg4[%c0_94, %c0_95, %c96], %144 {strides = array<i32>} : memref<2x8x256xf32, #tpu.memory_space<vmem>>, vector<1x8x16xf32>,
    %145 = vector.extract_strided_slice %116 {offsets = [0, 126], sizes = [8, 16], strides = [1, 1]} : vector<8x768xf32> to vector<8x16xf32>
    %c0_96 = arith.constant 0 : index
    %c0_97 = arith.constant 0 : index
    %c112 = arith.constant 112 : index
    %146 = vector.load %arg4[%c0_96, %c0_97, %c112] : memref<2x8x256xf32, #tpu.memory_space<vmem>>, vector<1x8x16xf32>
    %147 = vector.shape_cast %146 : vector<1x8x16xf32> to vector<8x16xf32>
    %148 = vector.shape_cast %145 : vector<8x16xf32> to vector<1x8x16xf32>
    tpu.vector_store %arg4[%c0_96, %c0_97, %c112], %148 {strides = array<i32>} : memref<2x8x256xf32, #tpu.memory_space<vmem>>, vector<1x8x16xf32>,
    %149 = vector.extract_strided_slice %116 {offsets = [0, 144], sizes = [8, 16], strides = [1, 1]} : vector<8x768xf32> to vector<8x16xf32>
    %c0_98 = arith.constant 0 : index
    %c0_99 = arith.constant 0 : index
    %c128 = arith.constant 128 : index
    %150 = vector.load %arg4[%c0_98, %c0_99, %c128] : memref<2x8x256xf32, #tpu.memory_space<vmem>>, vector<1x8x16xf32>
    %151 = vector.shape_cast %150 : vector<1x8x16xf32> to vector<8x16xf32>
    %152 = vector.shape_cast %149 : vector<8x16xf32> to vector<1x8x16xf32>
    tpu.vector_store %arg4[%c0_98, %c0_99, %c128], %152 {strides = array<i32>} : memref<2x8x256xf32, #tpu.memory_space<vmem>>, vector<1x8x16xf32>,
    %153 = vector.extract_strided_slice %116 {offsets = [0, 162], sizes = [8, 16], strides = [1, 1]} : vector<8x768xf32> to vector<8x16xf32>
    %c0_100 = arith.constant 0 : index
    %c0_101 = arith.constant 0 : index
    %c144 = arith.constant 144 : index
    %154 = vector.load %arg4[%c0_100, %c0_101, %c144] : memref<2x8x256xf32, #tpu.memory_space<vmem>>, vector<1x8x16xf32>
    %155 = vector.shape_cast %154 : vector<1x8x16xf32> to vector<8x16xf32>
    %156 = vector.shape_cast %153 : vector<8x16xf32> to vector<1x8x16xf32>
    tpu.vector_store %arg4[%c0_100, %c0_101, %c144], %156 {strides = array<i32>} : memref<2x8x256xf32, #tpu.memory_space<vmem>>, vector<1x8x16xf32>,
    %157 = vector.extract_strided_slice %116 {offsets = [0, 180], sizes = [8, 16], strides = [1, 1]} : vector<8x768xf32> to vector<8x16xf32>
    %c0_102 = arith.constant 0 : index
    %c0_103 = arith.constant 0 : index
    %c160 = arith.constant 160 : index
    %158 = vector.load %arg4[%c0_102, %c0_103, %c160] : memref<2x8x256xf32, #tpu.memory_space<vmem>>, vector<1x8x16xf32>
    %159 = vector.shape_cast %158 : vector<1x8x16xf32> to vector<8x16xf32>
    %160 = vector.shape_cast %157 : vector<8x16xf32> to vector<1x8x16xf32>
    tpu.vector_store %arg4[%c0_102, %c0_103, %c160], %160 {strides = array<i32>} : memref<2x8x256xf32, #tpu.memory_space<vmem>>, vector<1x8x16xf32>,
    %161 = vector.extract_strided_slice %116 {offsets = [0, 198], sizes = [8, 16], strides = [1, 1]} : vector<8x768xf32> to vector<8x16xf32>
    %c0_104 = arith.constant 0 : index
    %c0_105 = arith.constant 0 : index
    %c176 = arith.constant 176 : index
    %162 = vector.load %arg4[%c0_104, %c0_105, %c176] : memref<2x8x256xf32, #tpu.memory_space<vmem>>, vector<1x8x16xf32>
    %163 = vector.shape_cast %162 : vector<1x8x16xf32> to vector<8x16xf32>
    %164 = vector.shape_cast %161 : vector<8x16xf32> to vector<1x8x16xf32>
    tpu.vector_store %arg4[%c0_104, %c0_105, %c176], %164 {strides = array<i32>} : memref<2x8x256xf32, #tpu.memory_space<vmem>>, vector<1x8x16xf32>,
    %165 = vector.extract_strided_slice %116 {offsets = [0, 216], sizes = [8, 16], strides = [1, 1]} : vector<8x768xf32> to vector<8x16xf32>
    %c0_106 = arith.constant 0 : index
    %c0_107 = arith.constant 0 : index
    %c192 = arith.constant 192 : index
    %166 = vector.load %arg4[%c0_106, %c0_107, %c192] : memref<2x8x256xf32, #tpu.memory_space<vmem>>, vector<1x8x16xf32>
    %167 = vector.shape_cast %166 : vector<1x8x16xf32> to vector<8x16xf32>
    %168 = vector.shape_cast %165 : vector<8x16xf32> to vector<1x8x16xf32>
    tpu.vector_store %arg4[%c0_106, %c0_107, %c192], %168 {strides = array<i32>} : memref<2x8x256xf32, #tpu.memory_space<vmem>>, vector<1x8x16xf32>,
    %169 = vector.extract_strided_slice %116 {offsets = [0, 234], sizes = [8, 16], strides = [1, 1]} : vector<8x768xf32> to vector<8x16xf32>
    %c0_108 = arith.constant 0 : index
    %c0_109 = arith.constant 0 : index
    %c208 = arith.constant 208 : index
    %170 = vector.load %arg4[%c0_108, %c0_109, %c208] : memref<2x8x256xf32, #tpu.memory_space<vmem>>, vector<1x8x16xf32>
    %171 = vector.shape_cast %170 : vector<1x8x16xf32> to vector<8x16xf32>
    %172 = vector.shape_cast %169 : vector<8x16xf32> to vector<1x8x16xf32>
    tpu.vector_store %arg4[%c0_108, %c0_109, %c208], %172 {strides = array<i32>} : memref<2x8x256xf32, #tpu.memory_space<vmem>>, vector<1x8x16xf32>,
    %173 = vector.extract_strided_slice %116 {offsets = [0, 252], sizes = [8, 16], strides = [1, 1]} : vector<8x768xf32> to vector<8x16xf32>
    %c0_110 = arith.constant 0 : index
    %c0_111 = arith.constant 0 : index
    %c224 = arith.constant 224 : index
    %174 = vector.load %arg4[%c0_110, %c0_111, %c224] : memref<2x8x256xf32, #tpu.memory_space<vmem>>, vector<1x8x16xf32>
    %175 = vector.shape_cast %174 : vector<1x8x16xf32> to vector<8x16xf32>
    %176 = vector.shape_cast %173 : vector<8x16xf32> to vector<1x8x16xf32>
    tpu.vector_store %arg4[%c0_110, %c0_111, %c224], %176 {strides = array<i32>} : memref<2x8x256xf32, #tpu.memory_space<vmem>>, vector<1x8x16xf32>,
    %177 = vector.extract_strided_slice %116 {offsets = [0, 270], sizes = [8, 16], strides = [1, 1]} : vector<8x768xf32> to vector<8x16xf32>
    %c0_112 = arith.constant 0 : index
    %c0_113 = arith.constant 0 : index
    %c240 = arith.constant 240 : index
    %178 = vector.load %arg4[%c0_112, %c0_113, %c240] : memref<2x8x256xf32, #tpu.memory_space<vmem>>, vector<1x8x16xf32>
    %179 = vector.shape_cast %178 : vector<1x8x16xf32> to vector<8x16xf32>
    %180 = vector.shape_cast %177 : vector<8x16xf32> to vector<1x8x16xf32>
    tpu.vector_store %arg4[%c0_112, %c0_113, %c240], %180 {strides = array<i32>} : memref<2x8x256xf32, #tpu.memory_space<vmem>>, vector<1x8x16xf32>,
    %181 = vector.extract_strided_slice %116 {offsets = [0, 384], sizes = [8, 16], strides = [1, 1]} : vector<8x768xf32> to vector<8x16xf32>
    %c1 = arith.constant 1 : index
    %c0_114 = arith.constant 0 : index
    %c0_115 = arith.constant 0 : index
    %182 = vector.load %arg4[%c1, %c0_114, %c0_115] : memref<2x8x256xf32, #tpu.memory_space<vmem>>, vector<1x8x16xf32>
    %183 = vector.shape_cast %182 : vector<1x8x16xf32> to vector<8x16xf32>
    %184 = vector.shape_cast %181 : vector<8x16xf32> to vector<1x8x16xf32>
    tpu.vector_store %arg4[%c1, %c0_114, %c0_115], %184 {strides = array<i32>} : memref<2x8x256xf32, #tpu.memory_space<vmem>>, vector<1x8x16xf32>,
    %185 = vector.extract_strided_slice %116 {offsets = [0, 402], sizes = [8, 16], strides = [1, 1]} : vector<8x768xf32> to vector<8x16xf32>
    %c1_116 = arith.constant 1 : index
    %c0_117 = arith.constant 0 : index
    %c16_118 = arith.constant 16 : index
    %186 = vector.load %arg4[%c1_116, %c0_117, %c16_118] : memref<2x8x256xf32, #tpu.memory_space<vmem>>, vector<1x8x16xf32>
    %187 = vector.shape_cast %186 : vector<1x8x16xf32> to vector<8x16xf32>
    %188 = vector.shape_cast %185 : vector<8x16xf32> to vector<1x8x16xf32>
    tpu.vector_store %arg4[%c1_116, %c0_117, %c16_118], %188 {strides = array<i32>} : memref<2x8x256xf32, #tpu.memory_space<vmem>>, vector<1x8x16xf32>,
    %189 = vector.extract_strided_slice %116 {offsets = [0, 420], sizes = [8, 16], strides = [1, 1]} : vector<8x768xf32> to vector<8x16xf32>
    %c1_119 = arith.constant 1 : index
    %c0_120 = arith.constant 0 : index
    %c32_121 = arith.constant 32 : index
    %190 = vector.load %arg4[%c1_119, %c0_120, %c32_121] : memref<2x8x256xf32, #tpu.memory_space<vmem>>, vector<1x8x16xf32>
    %191 = vector.shape_cast %190 : vector<1x8x16xf32> to vector<8x16xf32>
    %192 = vector.shape_cast %189 : vector<8x16xf32> to vector<1x8x16xf32>
    tpu.vector_store %arg4[%c1_119, %c0_120, %c32_121], %192 {strides = array<i32>} : memref<2x8x256xf32, #tpu.memory_space<vmem>>, vector<1x8x16xf32>,
    %193 = vector.extract_strided_slice %116 {offsets = [0, 438], sizes = [8, 16], strides = [1, 1]} : vector<8x768xf32> to vector<8x16xf32>
    %c1_122 = arith.constant 1 : index
    %c0_123 = arith.constant 0 : index
    %c48_124 = arith.constant 48 : index
    %194 = vector.load %arg4[%c1_122, %c0_123, %c48_124] : memref<2x8x256xf32, #tpu.memory_space<vmem>>, vector<1x8x16xf32>
    %195 = vector.shape_cast %194 : vector<1x8x16xf32> to vector<8x16xf32>
    %196 = vector.shape_cast %193 : vector<8x16xf32> to vector<1x8x16xf32>
    tpu.vector_store %arg4[%c1_122, %c0_123, %c48_124], %196 {strides = array<i32>} : memref<2x8x256xf32, #tpu.memory_space<vmem>>, vector<1x8x16xf32>,
    %197 = vector.extract_strided_slice %116 {offsets = [0, 456], sizes = [8, 16], strides = [1, 1]} : vector<8x768xf32> to vector<8x16xf32>
    %c1_125 = arith.constant 1 : index
    %c0_126 = arith.constant 0 : index
    %c64_127 = arith.constant 64 : index
    %198 = vector.load %arg4[%c1_125, %c0_126, %c64_127] : memref<2x8x256xf32, #tpu.memory_space<vmem>>, vector<1x8x16xf32>
    %199 = vector.shape_cast %198 : vector<1x8x16xf32> to vector<8x16xf32>
    %200 = vector.shape_cast %197 : vector<8x16xf32> to vector<1x8x16xf32>
    tpu.vector_store %arg4[%c1_125, %c0_126, %c64_127], %200 {strides = array<i32>} : memref<2x8x256xf32, #tpu.memory_space<vmem>>, vector<1x8x16xf32>,
    %201 = vector.extract_strided_slice %116 {offsets = [0, 474], sizes = [8, 16], strides = [1, 1]} : vector<8x768xf32> to vector<8x16xf32>
    %c1_128 = arith.constant 1 : index
    %c0_129 = arith.constant 0 : index
    %c80_130 = arith.constant 80 : index
    %202 = vector.load %arg4[%c1_128, %c0_129, %c80_130] : memref<2x8x256xf32, #tpu.memory_space<vmem>>, vector<1x8x16xf32>
    %203 = vector.shape_cast %202 : vector<1x8x16xf32> to vector<8x16xf32>
    %204 = vector.shape_cast %201 : vector<8x16xf32> to vector<1x8x16xf32>
    tpu.vector_store %arg4[%c1_128, %c0_129, %c80_130], %204 {strides = array<i32>} : memref<2x8x256xf32, #tpu.memory_space<vmem>>, vector<1x8x16xf32>,
    %205 = vector.extract_strided_slice %116 {offsets = [0, 492], sizes = [8, 16], strides = [1, 1]} : vector<8x768xf32> to vector<8x16xf32>
    %c1_131 = arith.constant 1 : index
    %c0_132 = arith.constant 0 : index
    %c96_133 = arith.constant 96 : index
    %206 = vector.load %arg4[%c1_131, %c0_132, %c96_133] : memref<2x8x256xf32, #tpu.memory_space<vmem>>, vector<1x8x16xf32>
    %207 = vector.shape_cast %206 : vector<1x8x16xf32> to vector<8x16xf32>
    %208 = vector.shape_cast %205 : vector<8x16xf32> to vector<1x8x16xf32>
    tpu.vector_store %arg4[%c1_131, %c0_132, %c96_133], %208 {strides = array<i32>} : memref<2x8x256xf32, #tpu.memory_space<vmem>>, vector<1x8x16xf32>,
    %209 = vector.extract_strided_slice %116 {offsets = [0, 510], sizes = [8, 16], strides = [1, 1]} : vector<8x768xf32> to vector<8x16xf32>
    %c1_134 = arith.constant 1 : index
    %c0_135 = arith.constant 0 : index
    %c112_136 = arith.constant 112 : index
    %210 = vector.load %arg4[%c1_134, %c0_135, %c112_136] : memref<2x8x256xf32, #tpu.memory_space<vmem>>, vector<1x8x16xf32>
    %211 = vector.shape_cast %210 : vector<1x8x16xf32> to vector<8x16xf32>
    %212 = vector.shape_cast %209 : vector<8x16xf32> to vector<1x8x16xf32>
    tpu.vector_store %arg4[%c1_134, %c0_135, %c112_136], %212 {strides = array<i32>} : memref<2x8x256xf32, #tpu.memory_space<vmem>>, vector<1x8x16xf32>,
    %213 = vector.extract_strided_slice %116 {offsets = [0, 528], sizes = [8, 16], strides = [1, 1]} : vector<8x768xf32> to vector<8x16xf32>
    %c1_137 = arith.constant 1 : index
    %c0_138 = arith.constant 0 : index
    %c128_139 = arith.constant 128 : index
    %214 = vector.load %arg4[%c1_137, %c0_138, %c128_139] : memref<2x8x256xf32, #tpu.memory_space<vmem>>, vector<1x8x16xf32>
    %215 = vector.shape_cast %214 : vector<1x8x16xf32> to vector<8x16xf32>
    %216 = vector.shape_cast %213 : vector<8x16xf32> to vector<1x8x16xf32>
    tpu.vector_store %arg4[%c1_137, %c0_138, %c128_139], %216 {strides = array<i32>} : memref<2x8x256xf32, #tpu.memory_space<vmem>>, vector<1x8x16xf32>,
    %217 = vector.extract_strided_slice %116 {offsets = [0, 546], sizes = [8, 16], strides = [1, 1]} : vector<8x768xf32> to vector<8x16xf32>
    %c1_140 = arith.constant 1 : index
    %c0_141 = arith.constant 0 : index
    %c144_142 = arith.constant 144 : index
    %218 = vector.load %arg4[%c1_140, %c0_141, %c144_142] : memref<2x8x256xf32, #tpu.memory_space<vmem>>, vector<1x8x16xf32>
    %219 = vector.shape_cast %218 : vector<1x8x16xf32> to vector<8x16xf32>
    %220 = vector.shape_cast %217 : vector<8x16xf32> to vector<1x8x16xf32>
    tpu.vector_store %arg4[%c1_140, %c0_141, %c144_142], %220 {strides = array<i32>} : memref<2x8x256xf32, #tpu.memory_space<vmem>>, vector<1x8x16xf32>,
    %221 = vector.extract_strided_slice %116 {offsets = [0, 564], sizes = [8, 16], strides = [1, 1]} : vector<8x768xf32> to vector<8x16xf32>
    %c1_143 = arith.constant 1 : index
    %c0_144 = arith.constant 0 : index
    %c160_145 = arith.constant 160 : index
    %222 = vector.load %arg4[%c1_143, %c0_144, %c160_145] : memref<2x8x256xf32, #tpu.memory_space<vmem>>, vector<1x8x16xf32>
    %223 = vector.shape_cast %222 : vector<1x8x16xf32> to vector<8x16xf32>
    %224 = vector.shape_cast %221 : vector<8x16xf32> to vector<1x8x16xf32>
    tpu.vector_store %arg4[%c1_143, %c0_144, %c160_145], %224 {strides = array<i32>} : memref<2x8x256xf32, #tpu.memory_space<vmem>>, vector<1x8x16xf32>,
    %225 = vector.extract_strided_slice %116 {offsets = [0, 582], sizes = [8, 16], strides = [1, 1]} : vector<8x768xf32> to vector<8x16xf32>
    %c1_146 = arith.constant 1 : index
    %c0_147 = arith.constant 0 : index
    %c176_148 = arith.constant 176 : index
    %226 = vector.load %arg4[%c1_146, %c0_147, %c176_148] : memref<2x8x256xf32, #tpu.memory_space<vmem>>, vector<1x8x16xf32>
    %227 = vector.shape_cast %226 : vector<1x8x16xf32> to vector<8x16xf32>
    %228 = vector.shape_cast %225 : vector<8x16xf32> to vector<1x8x16xf32>
    tpu.vector_store %arg4[%c1_146, %c0_147, %c176_148], %228 {strides = array<i32>} : memref<2x8x256xf32, #tpu.memory_space<vmem>>, vector<1x8x16xf32>,
    %229 = vector.extract_strided_slice %116 {offsets = [0, 600], sizes = [8, 16], strides = [1, 1]} : vector<8x768xf32> to vector<8x16xf32>
    %c1_149 = arith.constant 1 : index
    %c0_150 = arith.constant 0 : index
    %c192_151 = arith.constant 192 : index
    %230 = vector.load %arg4[%c1_149, %c0_150, %c192_151] : memref<2x8x256xf32, #tpu.memory_space<vmem>>, vector<1x8x16xf32>
    %231 = vector.shape_cast %230 : vector<1x8x16xf32> to vector<8x16xf32>
    %232 = vector.shape_cast %229 : vector<8x16xf32> to vector<1x8x16xf32>
    tpu.vector_store %arg4[%c1_149, %c0_150, %c192_151], %232 {strides = array<i32>} : memref<2x8x256xf32, #tpu.memory_space<vmem>>, vector<1x8x16xf32>,
    %233 = vector.extract_strided_slice %116 {offsets = [0, 618], sizes = [8, 16], strides = [1, 1]} : vector<8x768xf32> to vector<8x16xf32>
    %c1_152 = arith.constant 1 : index
    %c0_153 = arith.constant 0 : index
    %c208_154 = arith.constant 208 : index
    %234 = vector.load %arg4[%c1_152, %c0_153, %c208_154] : memref<2x8x256xf32, #tpu.memory_space<vmem>>, vector<1x8x16xf32>
    %235 = vector.shape_cast %234 : vector<1x8x16xf32> to vector<8x16xf32>
    %236 = vector.shape_cast %233 : vector<8x16xf32> to vector<1x8x16xf32>
    tpu.vector_store %arg4[%c1_152, %c0_153, %c208_154], %236 {strides = array<i32>} : memref<2x8x256xf32, #tpu.memory_space<vmem>>, vector<1x8x16xf32>,
    %237 = vector.extract_strided_slice %116 {offsets = [0, 636], sizes = [8, 16], strides = [1, 1]} : vector<8x768xf32> to vector<8x16xf32>
    %c1_155 = arith.constant 1 : index
    %c0_156 = arith.constant 0 : index
    %c224_157 = arith.constant 224 : index
    %238 = vector.load %arg4[%c1_155, %c0_156, %c224_157] : memref<2x8x256xf32, #tpu.memory_space<vmem>>, vector<1x8x16xf32>
    %239 = vector.shape_cast %238 : vector<1x8x16xf32> to vector<8x16xf32>
    %240 = vector.shape_cast %237 : vector<8x16xf32> to vector<1x8x16xf32>
    tpu.vector_store %arg4[%c1_155, %c0_156, %c224_157], %240 {strides = array<i32>} : memref<2x8x256xf32, #tpu.memory_space<vmem>>, vector<1x8x16xf32>,
    %241 = vector.extract_strided_slice %116 {offsets = [0, 654], sizes = [8, 16], strides = [1, 1]} : vector<8x768xf32> to vector<8x16xf32>
    %c1_158 = arith.constant 1 : index
    %c0_159 = arith.constant 0 : index
    %c240_160 = arith.constant 240 : index
    %242 = vector.load %arg4[%c1_158, %c0_159, %c240_160] : memref<2x8x256xf32, #tpu.memory_space<vmem>>, vector<1x8x16xf32>
    %243 = vector.shape_cast %242 : vector<1x8x16xf32> to vector<8x16xf32>
    %244 = vector.shape_cast %241 : vector<8x16xf32> to vector<1x8x16xf32>
    tpu.vector_store %arg4[%c1_158, %c0_159, %c240_160], %244 {strides = array<i32>} : memref<2x8x256xf32, #tpu.memory_space<vmem>>, vector<1x8x16xf32>,
    return
  }
  func.func @transform_0(%arg0: i32) -> (i32, i32, i32, i32) {
    %c0_i32 = arith.constant 0 : i32
    %c0_i32_0 = arith.constant 0 : i32
    %c0_i32_1 = arith.constant 0 : i32
    %c0_i32_2 = arith.constant 0 : i32
    %c0_i32_3 = arith.constant 0 : i32
    return %c0_i32, %c0_i32_0, %c0_i32_1, %c0_i32_2 : i32, i32, i32, i32
  }
  func.func @transform_1(%arg0: i32) -> (i32, i32) {
    %c0_i32 = arith.constant 0 : i32
    %c0_i32_0 = arith.constant 0 : i32
    %c0_i32_1 = arith.constant 0 : i32
    return %c0_i32, %c0_i32_0 : i32, i32
  }
  func.func @transform_2(%arg0: i32) -> (i32, i32) {
    %c0_i32 = arith.constant 0 : i32
    %c0_i32_0 = arith.constant 0 : i32
    %c0_i32_1 = arith.constant 0 : i32
    return %c0_i32, %c0_i32_0 : i32, i32
  }
  func.func @transform_3(%arg0: i32) -> (i32, i32, i32) {
    %c0_i32 = arith.constant 0 : i32
    %c0_i32_0 = arith.constant 0 : i32
    %c0_i32_1 = arith.constant 0 : i32
    %c0_i32_2 = arith.constant 0 : i32
    return %c0_i32, %c0_i32_0, %c0_i32_1 : i32, i32, i32
  }
}

</mosaic_0001>

<bundles_post_ra>
// kernel: base_block_forward.1
= control target key start
LH: loop header
LB: loop body
LE: loop exit
PB: predicated region body
PF: predicated region fallthrough
CT: control target
= control target key end

     0   :  { %8 = vsyncpa [#allocation5], 0  ;;  %s1879_s12 = smov [#allocation4]   ;;  %s2700_s0 = inlined_call_operand.hbm [shape: f32[2,4,16,16], index: 0, kind: input, shape index: {}]   ;;  %s2701_s1 = inlined_call_operand.vmem [shape: bf16[8,36], index: 1, kind: input, shape index: {}]   ;;  %s2702_s2 = inlined_call_operand.vmem [shape: f32[8,1], index: 2, kind: input, shape index: {}]   ;;  %s2703_s3 = inlined_call_operand.vmem [shape: f32[2,8,256], index: 3, kind: output, shape index: {}]  }
   0x1   :  { %s14_s13 = sshll.u32 %s1879_s12, 4  ;;  %s15_s13 = int_to_ptr.vmem [resolvable:$true] %s14_s13 }
   0x2   :  { %s1865_s14 = scalar_lea.vmem %s15_s13, 2048  ;;  %p1870_p1 = scmp.lt.s32.totalorder %s15_s13, %s15_s13 }
   0x3   :  { %p1866_p0 = scmp.ne.s32.totalorder %s15_s13, %s1865_s14  ;;  %p1871_p2 = scmp.lt.s32.totalorder %s1865_s14, %s1865_s14 }
   0x5   :  { %p1872_p3 = por %p1871_p2, %p1870_p1 }
   0x7   :  { %p1873_p4 = pnand %p1872_p3, %p1866_p0 }
   0x9   :  { %1876 = shalt.err (!%p1873_p4)
}
   0xa   :  { %s1880_s15 = smov 128   ;;  %s1881_s16 = smov 8  }
   0xb   :  { %20 = dma.hbm_to_vmem [thread:$0]  %s2700_s0, 2048, %s15_s13, [#allocation5], %s1880_s15, %s1880_s15, %s1881_s16  }
   0xc   :  { %1877 = dma.done.wait [#allocation5], 2048  }
   0xd   :  { %1878 = vsyncadd [#allocation5], 4294965248  ;;  %v81_v0 = vlaneseq  ;;  %v1882_v1 = vmov 1983009808   ;;  %v46_v6 = vld [vmem:[#allocation4] sm:$0xff]  ;;  %v47_v7 = vld [vmem:[#allocation4 + $0x8] sm:$0xff] }
   0xe   :  { %v79_v2 = vunpack.c.l.s4 %v1882_v1  ;;  %v48_v8 = vld [vmem:[#allocation4 + $0x10] sm:$0xff]  ;;  %v49_v9 = vld [vmem:[#allocation4 + $0x18] sm:$0xff]  ;;  %v50_v10 = vld [vmem:[#allocation4 + $0x20] sm:$0xff]  ;;  %v62_v12 = vpack.c.bf16 %v47_v7, %v46_v6  ;;  %vm199_vm0 = vcmask 1041409   ;;  %v1744_v13 = vpack.c.bf16 %v47_v7, %v47_v7  ;;  %s1883_s0 = smov 55   ;;  %s1884_s19 = smov 19  }
   0xf   :  { %v82_v3 = vshrl.u32 %v81_v0, 7  ;;  %v51_v11 = vld [vmem:[#allocation4 + $0x28] sm:$0xff]  ;;  %v52_v14 = vld [vmem:[#allocation4 + $0x30] sm:$0xff]  ;;  %v53_v15 = vld [vmem:[#allocation4 + $0x38] sm:$0xff]  ;;  %v63_v16 = vpack.c.bf16 %v49_v9, %v48_v8  ;;  %vm202_vm1 = vcmask 1042434   ;;  %v1745_v19 = vpack.c.bf16 %v49_v9, %v49_v9  ;;  %s1885_s20 = smov 73  }
  0x10   :  { %v80_v4 = vunpack.c.0.s8 %v79_v2  ;;  %v64_v17 = vpack.c.bf16 %v51_v11, %v50_v10  ;;  %v1746_v18 = vpack.c.bf16 %v51_v11, %v51_v11  ;;  %v65_v20 = vpack.c.bf16 %v53_v15, %v52_v14  ;;  %s1886_s21 = smov 37   ;;  %s1887_s22 = smov 53  }
  0x11   :  { %vm205_vm2 = vcmask 1043459   ;;  %v1747_v22 = vpack.c.bf16 %v53_v15, %v53_v15  ;;  %s1888_s23 = smov 35   ;;  %s1889_s24 = smov 89   ;;  %vm235_vm3 = vcmask 279704   ;;  %vm272_vm4 = vcmask 427304  }
  0x12   :  { %v1940_v5 = vsub.s32 %v80_v4, %v82_v3  ;;  %s1890_s25 = smov 71   ;;  %s1891_s26 = smov 91   ;;  %vm309_vm5 = vcmask 574904   ;;  %vm346_vm6 = vcmask 722504   ;;  %vm455_vm7 = vcmask 870104  }
  0x13   :  { %s1892_s27 = smov 17   ;;  %s1893_s28 = smov 127   ;;  %vm534_vm8 = vcmask 1042424   ;;  %vm535_vm9 = vcmask 117762   ;;  %vm529_vm10 = vcmask 1039360   ;;  %vm2704_vm11 = vcmask 1017704  }
  0x14   :  { %v1943_v21 = vrot.slane %v62_v12, %v1940_v5  ;;  %v1946_v23 = vrot.slane %v1744_v13, %v1940_v5  ;;  %v1949_v24 = vrot.slane %v63_v16, %v1940_v5  ;;  %v98_v25 = vrot.slane %v64_v17, %v1940_v5  ;;  %s1894_s29 = smov 109   ;;  %s1895_s30 = smov 125   ;;  %vm2356_vm12 = vmor %vm535_vm9, %vm534_vm8 }
  0x15   :  { %v1953_v26 = vrot.slane %v1746_v18, %v1940_v5  ;;  %v1956_v27 = vrot.slane %v1745_v19, %v1940_v5  ;;  %v1959_v28 = vrot.slane %v65_v20, %v1940_v5  ;;  %v1964_v30 = vrot.slane %v1747_v22, %v1940_v5  ;;  %s1896_s4 = smov 107   ;;  %s1897_s5 = smov 15  }
  0x16   :  { %v140_v29 = vrot.slane %v1943_v21, %v1940_v5  ;;  %v646_v31 = vrot.slane %v1946_v23, %v1940_v5  ;;  %v147_v32 = vrot.slane %v1949_v24, %v1940_v5  ;;  %v154_v33 = vrot.slane %v98_v25, %v1940_v5  ;;  %s1898_s6 = smov 33   ;;  %s1900_s7 = smov 108  }
  0x17   :  { %v350_v34 = vcombine.high %v1949_v24, %v1949_v24  ;;  %v351_v35 = vcombine.high %v98_v25, %v98_v25  ;;  %v161_v36 = vrot.slane %v1959_v28, %v1940_v5  ;;  %v352_v38 = vcombine.high %v1959_v28, %v1959_v28  ;;  %s1901_s8 = smov 90   ;;  %s1902_s9 = smov 92  }
  0x18   :  { %v190_v37 = vunpack.c.l.b16 %v140_v29  ;;  %v653_v39 = vrot.slane %v1956_v27, %v1940_v5  ;;  %v191_v40 = vunpack.c.l.b16 %v147_v32  ;;  %v192_v41 = vunpack.c.l.b16 %v154_v33  ;;  %s1903_s10 = smov 110   ;;  %s1904_s11 = smov 126  }
  0x19   :  { %v1980_v42 = vrot.slane %v351_v35, %v1940_v5  ;;  %v660_v43 = vrot.slane %v1953_v26, %v1940_v5  ;;  %v193_v44 = vunpack.c.l.b16 %v161_v36  ;;  %v667_v10 = vrot.slane %v1964_v30, %v1940_v5  ;;  %s1906_s17 = smov 120   ;;  %s1907_s18 = smov 124  }
  0x1a   :  { %v275_v45 = vrot.slane %v190_v37, 2  ;;  %v312_v46 = vrot.slane %v190_v37, 3  ;;  %v238_v47 = vrot.slane %v190_v37, 1  ;;  %v276_v48 = vrot.slane %v191_v40, 1 }
  0x1b   :  { %v198_v49 = vrot.slane %v191_v40, 7  ;;  %v201_v50 = vrot.slane %v192_v41, 6  ;;  %v313_v51 = vrot.slane %v191_v40, 2  ;;  %v279_v52 = vrot.slane %v193_v44, 7 }
  0x1c   :  { %v204_v53 = vrot.slane %v193_v44, 5  ;;  %v315_v54 = vrot.slane %v192_v41, 1  ;;  %v239_v55 = vsel %vm199_vm0, %v191_v40, %v238_v47  ;;  %v277_v56 = vsel %vm199_vm0, %v276_v48, %v275_v45 }
  0x1d   :  { %v200_v57 = vsel %vm199_vm0, %v198_v49, %v190_v37  ;;  %v314_v58 = vsel %vm199_vm0, %v313_v51, %v312_v46  ;;  %v240_v59 = vrot.slane %v192_v41, 7  ;;  %v278_v60 = vsel %vm202_vm1, %v192_v41, %v277_v56  ;;  %v2022_v56 = vld [vmem:[#allocation4 + $0x48] sm:$0xff] }
  0x1e   :  { %v203_v61 = vsel %vm202_vm1, %v201_v50, %v200_v57  ;;  %v316_v62 = vsel %vm202_vm1, %v315_v54, %v314_v58  ;;  %v242_v63 = vrot.slane %v193_v44, 6  ;;  %v280_v0 = vsel %vm205_vm2, %v279_v52, %v278_v60 }
  0x1f   :  { %v206_v1 = vsel %vm205_vm2, %v204_v53, %v203_v61  ;;  %v317_v2 = vsel %vm205_vm2, %v193_v44, %v316_v62  ;;  %v241_v3 = vsel %vm202_vm1, %v240_v59, %v239_v55  ;;  %v287_v4 = vpack.c.b16 %v280_v0, %v280_v0  ;;  %v54_v55 = vld [vmem:[#allocation4 + $0x40] sm:$0xff]  ;;  %v56_v61 = vld [vmem:[#allocation4 + $0x50] sm:$0xff]  ;;  %v2027_v62 = vld [vmem:[#allocation4 + $0x58] sm:$0xff] }
  0x20   :  { %v213_v6 = vpack.c.b16 %v206_v1, %v206_v1  ;;  %v324_v7 = vpack.c.b16 %v317_v2, %v317_v2  ;;  %v243_v8 = vsel %vm205_vm2, %v242_v63, %v241_v3  ;;  %v696_v11 = vunpack.c.l.b16 %v646_v31  ;;  %v58_v63 = vld [vmem:[#allocation4 + $0x60] sm:$0xff]  ;;  %v2037_v1 = vld [vmem:[#allocation4 + $0x68] sm:$0xff]  ;;  %v60_v2 = vld [vmem:[#allocation4 + $0x70] sm:$0xff] }
  0x21   :  { %v250_v9 = vpack.c.b16 %v243_v8, %v243_v8  ;;  %v697_v12 = vunpack.c.l.b16 %v653_v39  ;;  %v295_v13 = vrot.slane %v287_v4, %v1940_v5  ;;  %v698_v16 = vunpack.c.l.b16 %v660_v43  ;;  %v2039_v3 = vld [vmem:[#allocation4 + $0x78] sm:$0xff] }
  0x22   :  { %v221_v14 = vrot.slane %v213_v6, %v1940_v5  ;;  %v332_v15 = vrot.slane %v324_v7, %v1940_v5  ;;  %v699_v18 = vunpack.c.l.b16 %v667_v10  ;;  %v741_v19 = vrot.slane %v696_v11, 1 }
  0x23   :  { %v258_v17 = vrot.slane %v250_v9, %v1940_v5  ;;  %v704_v20 = vrot.slane %v697_v12, 7  ;;  %303 = vrot.lane.b32.xlu1 %v295_v13, %s1883_s0  ;;  %v743_v22 = vrot.slane %v698_v16, 7  ;;  %v706_v25 = vrot.slane %v698_v16, 6 }
  0x24   :  { %229 = vrot.lane.b32.xlu0 %v221_v14, %s1884_s19  ;;  %v815_v29 = vrot.slane %v696_v11, 3  ;;  %v816_v31 = vrot.slane %v697_v12, 2  ;;  %v742_v32 = vsel %vm199_vm0, %v697_v12, %v741_v19  ;;  %v745_v33 = vrot.slane %v699_v18, 6 }
  0x25   :  { %v705_v35 = vsel %vm199_vm0, %v704_v20, %v696_v11  ;;  %v708_v36 = vrot.slane %v699_v18, 5  ;;  %v744_v37 = vsel %vm202_vm1, %v743_v22, %v742_v32  ;;  %v818_v41 = vrot.slane %v698_v16, 1 }
  0x26   :  { %v707_v39 = vsel %vm202_vm1, %v706_v25, %v705_v35  ;;  %v817_v40 = vsel %vm199_vm0, %v816_v31, %v815_v29  ;;  %v746_v43 = vsel %vm205_vm2, %v745_v33, %v744_v37  ;;  %v778_v45 = vrot.slane %v696_v11, 2 }
  0x27   :  { %v709_v44 = vsel %vm205_vm2, %v708_v36, %v707_v39  ;;  %v779_v46 = vrot.slane %v697_v12, 1  ;;  %340 = vrot.lane.b32.xlu1 %v332_v15, %s1885_s20  ;;  %v753_v47 = vpack.c.b16 %v746_v43, %v746_v43  ;;  %v819_v49 = vsel %vm202_vm1, %v818_v41, %v817_v40 }
  0x28   :  { %266 = vrot.lane.b32.xlu0 %v258_v17, %s1886_s21  ;;  %v716_v48 = vpack.c.b16 %v709_v44, %v709_v44  ;;  %v782_v50 = vrot.slane %v699_v18, 7  ;;  %v820_v51 = vsel %vm205_vm2, %v699_v18, %v819_v49  ;;  %v349_v53 = vcombine.high %v1943_v21, %v1943_v21 }
  0x29   :  { %v780_v52 = vsel %vm199_vm0, %v779_v46, %v778_v45  ;;  %v370_v54 = vrot.slane %v350_v34, %v1940_v5  ;;  %v761_v57 = vrot.slane %v753_v47, %v1940_v5  ;;  %v827_v59 = vpack.c.b16 %v820_v51, %v820_v51 }
  0x2a   :  { %v724_v58 = vrot.slane %v716_v48, %v1940_v5  ;;  %v781_v60 = vsel %vm202_vm1, %v698_v16, %v780_v52  ;;  %v363_v0 = vrot.slane %v349_v53, %v1940_v5  ;;  %v384_v24 = vrot.slane %v352_v38, %v1940_v5 }
  0x2b   :  { %v783_v21 = vsel %vm205_vm2, %v782_v50, %v781_v60  ;;  %v2035_v34 = vunpack.c.l.b16 %v370_v54  ;;  %769 = vrot.lane.b32.xlu1 %v761_v57, %s1887_s22  ;;  %v835_v4 = vrot.slane %v827_v59, %v1940_v5  ;;  %v2045_v7 = vunpack.c.l.b16 %v1980_v42 }
  0x2c   :  { %732 = vrot.lane.b32.xlu0 %v724_v58, %s1888_s23  ;;  %v790_v6 = vpack.c.b16 %v783_v21, %v783_v21  ;;  %v66_v28 = vpack.c.bf16 %v2022_v56, %v54_v55  ;;  %v2048_v38 = vunpack.c.l.b16 %v363_v0  ;;  %v2050_v8 = vunpack.c.l.b16 %v384_v24 }
  0x2d   :  { %v421_v9 = vrot.slane %v2035_v34, 7  ;;  %v67_v10 = vpack.c.bf16 %v2027_v62, %v56_v61  ;;  %v423_v12 = vrot.slane %v2045_v7, 6  ;;  %v68_v13 = vpack.c.bf16 %v2037_v1, %v58_v63 }
  0x2e   :  { %v798_v11 = vrot.slane %v790_v6, %v1940_v5  ;;  %v69_v14 = vpack.c.bf16 %v2039_v3, %v60_v2  ;;  %v425_v15 = vrot.slane %v2050_v8, 5  ;;  %v2062_v16 = vrot.slane %v66_v28, %v1940_v5 }
  0x2f   :  { %v422_v42 = vsel %vm199_vm0, %v421_v9, %v2048_v38  ;;  %v2065_v17 = vrot.slane %v67_v10, %v1940_v5  ;;  %843 = vrot.lane.b32.xlu1 %v835_v4, %s1889_s24  ;;  %v2071_v19 = vrot.slane %v68_v13, %v1940_v5  ;;  %v539_v22 = vrot.slane %v2048_v38, 3 }
  0x30   :  { %806 = vrot.lane.b32.xlu0 %v798_v11, %s1890_s25  ;;  %v424_v18 = vsel %vm202_vm1, %v423_v12, %v422_v42  ;;  %v2074_v20 = vrot.slane %v69_v14, %v1940_v5  ;;  %v168_v29 = vrot.slane %v2062_v16, %v1940_v5  ;;  %v353_v32 = vcombine.high %v2062_v16, %v2062_v16 }
  0x31   :  { %v426_v25 = vsel %vm205_vm2, %v425_v15, %v424_v18  ;;  %v175_v31 = vrot.slane %v2065_v17, %v1940_v5  ;;  %v182_v35 = vrot.slane %v2071_v19, %v1940_v5  ;;  %v1748_v37 = vpack.c.bf16 %v2022_v56, %v2022_v56 }
  0x32   :  { %v433_v33 = vpack.c.b16 %v426_v25, %v426_v25  ;;  %v189_v36 = vrot.slane %v2074_v20, %v1940_v5  ;;  %v2090_v39 = vunpack.c.l.b16 %v168_v29  ;;  %v540_v41 = vrot.slane %v2035_v34, 2 }
  0x33   :  { %v2092_v40 = vunpack.c.l.b16 %v175_v31  ;;  %v542_v43 = vrot.slane %v2045_v7, 1  ;;  %v2097_v45 = vunpack.c.l.b16 %v182_v35  ;;  %v495_v47 = vrot.slane %v2048_v38, 2 }
  0x34   :  { %v441_v44 = vrot.slane %v433_v33, %v1940_v5  ;;  %v2099_v46 = vunpack.c.l.b16 %v189_v36  ;;  %v541_v49 = vsel %vm199_vm0, %v540_v41, %v539_v22  ;;  %v496_v50 = vrot.slane %v2035_v34, 1 }
  0x35   :  { %v207_v48 = vrot.slane %v2092_v40, 7  ;;  %v499_v51 = vrot.slane %v2050_v8, 7  ;;  %v209_v52 = vrot.slane %v2097_v45, 6  ;;  %v543_v54 = vsel %vm202_vm1, %v542_v43, %v541_v49 }
  0x36   :  { %449 = vrot.lane.b32.xlu1 %v441_v44, %s1891_s26  ;;  %v211_v53 = vrot.slane %v2099_v46, 5  ;;  %v852_v55 = vcombine.high %v1946_v23, %v1946_v23  ;;  %v544_v58 = vsel %vm205_vm2, %v2050_v8, %v543_v54  ;;  %v497_v59 = vsel %vm199_vm0, %v496_v50, %v495_v47 }
  0x37   :  { %v208_v57 = vsel %vm199_vm0, %v207_v48, %v2090_v39  ;;  %v853_v60 = vcombine.high %v1956_v27, %v1956_v27  ;;  %v551_v63 = vpack.c.b16 %v544_v58, %v544_v58  ;;  %v498_v21 = vsel %vm202_vm1, %v2045_v7, %v497_v59 }
  0x38   :  { %v210_v61 = vsel %vm202_vm1, %v209_v52, %v208_v57  ;;  %v854_v23 = vcombine.high %v1953_v26, %v1953_v26  ;;  %v500_v24 = vsel %vm205_vm2, %v499_v51, %v498_v21  ;;  %v855_v2 = vcombine.high %v1964_v30, %v1964_v30 }
  0x39   :  { %v212_v0 = vsel %vm205_vm2, %v211_v53, %v210_v61  ;;  %v866_v4 = vrot.slane %v852_v55, %v1940_v5  ;;  %v559_v27 = vrot.slane %v551_v63, %v1940_v5  ;;  %v507_v28 = vpack.c.b16 %v500_v24, %v500_v24 }
  0x3a   :  { %v214_v6 = vpack.c.b16 %v212_v0, %v212_v0  ;;  %v873_v9 = vrot.slane %v853_v60, %v1940_v5  ;;  %v880_v10 = vrot.slane %v854_v23, %v1940_v5  ;;  %v887_v11 = vrot.slane %v855_v2, %v1940_v5 }
  0x3b   :  { %v2133_v26 = vunpack.c.l.b16 %v866_v4  ;;  %v458_v12 = vrot.slane %v2048_v38, 1  ;;  %567 = vrot.lane.b32.xlu1 %v559_v27, %s1892_s27  ;;  %v515_v30 = vrot.slane %v507_v28, %v1940_v5  ;;  %v460_v42 = vrot.slane %v2045_v7, 7 }
  0x3c   :  { %v228_v13 = vrot.slane %v214_v6, %v1940_v5  ;;  %v2139_v14 = vunpack.c.l.b16 %v873_v9  ;;  %v2142_v15 = vunpack.c.l.b16 %v880_v10  ;;  %v2144_v18 = vunpack.c.l.b16 %v887_v11 }
  0x3d   :  { %v961_v22 = vrot.slane %v2133_v26, 1  ;;  %v459_v38 = vsel %vm199_vm0, %v2035_v34, %v458_v12  ;;  %v462_v29 = vrot.slane %v2050_v8, 6  ;;  %v244_v33 = vrot.slane %v2090_v39, 1 }
  0x3e   :  { %231 = vrot.lane.b32.xlu0 %v228_v13, %s1884_s19  ;;  %v461_v25 = vsel %vm202_vm1, %v460_v42, %v459_v38  ;;  %v924_v31 = vrot.slane %v2139_v14, 7  ;;  %v963_v35 = vrot.slane %v2142_v15, 7  ;;  %v965_v36 = vrot.slane %v2144_v18, 6  ;;  %s1909_s19 = smov 116  }
  0x3f   :  { %v962_v7 = vsel %vm199_vm0, %v2139_v14, %v961_v22  ;;  %v926_v41 = vrot.slane %v2142_v15, 6  ;;  %v463_v34 = vsel %vm205_vm2, %v462_v29, %v461_v25  ;;  %v928_v8 = vrot.slane %v2144_v18, 5 }
  0x40   :  { %v925_v43 = vsel %vm199_vm0, %v924_v31, %v2133_v26  ;;  %v245_v44 = vsel %vm199_vm0, %v2092_v40, %v244_v33  ;;  %v964_v47 = vsel %vm202_vm1, %v963_v35, %v962_v7  ;;  %v470_v48 = vpack.c.b16 %v463_v34, %v463_v34 }
  0x41   :  { %v927_v49 = vsel %vm202_vm1, %v926_v41, %v925_v43  ;;  %v246_v50 = vrot.slane %v2097_v45, 7  ;;  %v966_v51 = vsel %vm205_vm2, %v965_v36, %v964_v47  ;;  %v248_v53 = vrot.slane %v2099_v46, 6 }
  0x42   :  { %523 = vrot.lane.b32.xlu0 %v515_v30, %s1893_s28  ;;  %v929_v52 = vsel %vm205_vm2, %v928_v8, %v927_v49  ;;  %v318_v54 = vrot.slane %v2090_v39, 3  ;;  %v973_v55 = vpack.c.b16 %v966_v51, %v966_v51  ;;  %v478_v57 = vrot.slane %v470_v48, %v1940_v5 }
  0x43   :  { %v936_v58 = vpack.c.b16 %v929_v52, %v929_v52  ;;  %v247_v59 = vsel %vm202_vm1, %v246_v50, %v245_v44  ;;  %v319_v61 = vrot.slane %v2092_v40, 2  ;;  %v321_v63 = vrot.slane %v2097_v45, 1 }
  0x44   :  { %v249_v60 = vsel %vm205_vm2, %v248_v53, %v247_v59  ;;  %v281_v21 = vrot.slane %v2090_v39, 2  ;;  %v981_v23 = vrot.slane %v973_v55, %v1940_v5  ;;  %v282_v2 = vrot.slane %v2092_v40, 1 }
  0x45   :  { %v944_v0 = vrot.slane %v936_v58, %v1940_v5  ;;  %v251_v24 = vpack.c.b16 %v249_v60, %v249_v60  ;;  %v320_v4 = vsel %vm199_vm0, %v319_v61, %v318_v54  ;;  %v285_v6 = vrot.slane %v2099_v46, 7 }
  0x46   :  { %486 = vrot.lane.b32.xlu0 %v478_v57, %s1894_s29  ;;  %v1005_v27 = vrot.slane %v2133_v26, 2  ;;  %v1006_v28 = vrot.slane %v2139_v14, 1  ;;  %989 = vrot.lane.b32.xlu1 %v981_v23, %s1895_s30  ;;  %v322_v9 = vsel %vm202_vm1, %v321_v63, %v320_v4  ;;  %v283_v40 = vsel %vm199_vm0, %v282_v2, %v281_v21 }
  0x47   :  { %v265_v39 = vrot.slane %v251_v24, %v1940_v5  ;;  %v1009_v10 = vrot.slane %v2144_v18, 7  ;;  %v323_v11 = vsel %vm205_vm2, %v2099_v46, %v322_v9  ;;  %v284_v12 = vsel %vm202_vm1, %v2097_v45, %v283_v40 }
  0x48   :  { %v1007_v13 = vsel %vm199_vm0, %v1006_v28, %v1005_v27  ;;  %v354_v30 = vcombine.high %v2065_v17, %v2065_v17  ;;  %v325_v42 = vpack.c.b16 %v323_v11, %v323_v11  ;;  %v286_v22 = vsel %vm205_vm2, %v285_v6, %v284_v12 }
  0x49   :  { %v1008_v38 = vsel %vm202_vm1, %v2142_v15, %v1007_v13  ;;  %v355_v25 = vcombine.high %v2071_v19, %v2071_v19  ;;  %v288_v46 = vpack.c.b16 %v286_v22, %v286_v22  ;;  %v356_v45 = vcombine.high %v2074_v20, %v2074_v20 }
  0x4a   :  { %268 = vrot.lane.b32.xlu0 %v265_v39, %s1886_s21  ;;  %v1010_v29 = vsel %vm205_vm2, %v1009_v10, %v1008_v38  ;;  %v391_v17 = vrot.slane %v353_v32, %v1940_v5  ;;  %952 = vrot.lane.b32.xlu1 %v944_v0, %s1896_s4  ;;  %v339_v31 = vrot.slane %v325_v42, %v1940_v5  ;;  %v1042_v41 = vrot.slane %v2133_v26, 3  ;;  %s1911_s21 = smov 100  }
  0x4b   :  { %v1017_v33 = vpack.c.b16 %v1010_v29, %v1010_v29  ;;  %v398_v19 = vrot.slane %v354_v30, %v1940_v5  ;;  %v405_v7 = vrot.slane %v355_v25, %v1940_v5  ;;  %v302_v35 = vrot.slane %v288_v46, %v1940_v5 }
  0x4c   :  { %v412_v36 = vrot.slane %v356_v45, %v1940_v5  ;;  %v417_v20 = vunpack.c.l.b16 %v391_v17  ;;  %v1043_v43 = vrot.slane %v2139_v14, 2  ;;  %v1045_v47 = vrot.slane %v2142_v15, 1 }
  0x4d   :  { %v1025_v16 = vrot.slane %v1017_v33, %v1940_v5  ;;  %v418_v32 = vunpack.c.l.b16 %v398_v19  ;;  %v419_v34 = vunpack.c.l.b16 %v405_v7  ;;  %v615_v11 = vrot.slane %v1748_v37, %v1940_v5 }
  0x4e   :  { %305 = vrot.lane.b32.xlu0 %v302_v35, %s1883_s0  ;;  %v420_v8 = vunpack.c.l.b16 %v412_v36  ;;  %v501_v44 = vrot.slane %v417_v20, 2  ;;  %v545_v48 = vrot.slane %v417_v20, 3  ;;  %342 = vrot.lane.b32.xlu1 %v339_v31, %s1885_s20  ;;  %v1044_v50 = vsel %vm199_vm0, %v1043_v43, %v1042_v41  ;;  %s1908_s0 = smov 118   ;;  %s1910_s20 = smov 112  }
  0x4f   :  { %v502_v49 = vrot.slane %v418_v32, 1  ;;  %v427_v51 = vrot.slane %v418_v32, 7  ;;  %v429_v26 = vrot.slane %v419_v34, 6  ;;  %v1046_v53 = vsel %vm202_vm1, %v1045_v47, %v1044_v50 }
  0x50   :  { %v505_v52 = vrot.slane %v420_v8, 7  ;;  %v431_v54 = vrot.slane %v420_v8, 5  ;;  %v546_v55 = vrot.slane %v418_v32, 2  ;;  %v1047_v57 = vsel %vm205_vm2, %v2144_v18, %v1046_v53 }
  0x51   :  { %v503_v14 = vsel %vm199_vm0, %v502_v49, %v501_v44  ;;  %v428_v15 = vsel %vm199_vm0, %v427_v51, %v417_v20  ;;  %v548_v58 = vrot.slane %v419_v34, 1  ;;  %v1054_v60 = vpack.c.b16 %v1047_v57, %v1047_v57 }
  0x52   :  { %v504_v59 = vsel %vm202_vm1, %v419_v34, %v503_v14  ;;  %v430_v61 = vsel %vm202_vm1, %v429_v26, %v428_v15  ;;  %v547_v63 = vsel %vm199_vm0, %v546_v55, %v545_v48  ;;  %1033 = vrot.lane.b32.xlu1 %v1025_v16, %s1897_s5  ;;  %v464_v18 = vrot.slane %v417_v20, 1 }
  0x53   :  { %v506_v21 = vsel %vm205_vm2, %v505_v52, %v504_v59  ;;  %v432_v23 = vsel %vm205_vm2, %v431_v54, %v430_v61  ;;  %v549_v0 = vsel %vm202_vm1, %v548_v58, %v547_v63  ;;  %v1062_v2 = vrot.slane %v1054_v60, %v1940_v5 }
  0x54   :  { %v508_v24 = vpack.c.b16 %v506_v21, %v506_v21  ;;  %v434_v4 = vpack.c.b16 %v432_v23, %v432_v23  ;;  %v550_v6 = vsel %vm205_vm2, %v420_v8, %v549_v0  ;;  %v465_v28 = vsel %vm199_vm0, %v418_v32, %v464_v18 }
  0x55   :  { %v552_v27 = vpack.c.b16 %v550_v6, %v550_v6  ;;  %v466_v39 = vrot.slane %v419_v34, 7  ;;  %v468_v9 = vrot.slane %v420_v8, 6  ;;  %v1749_v12 = vpack.c.bf16 %v2027_v62, %v2027_v62 }
  0x56   :  { %v522_v40 = vrot.slane %v508_v24, %v1940_v5  ;;  %v448_v10 = vrot.slane %v434_v4, %v1940_v5  ;;  %1070 = vrot.lane.b32.xlu1 %v1062_v2, %s1898_s6  ;;  %v1750_v42 = vpack.c.bf16 %v2037_v1, %v2037_v1  ;;  %v1751_v22 = vpack.c.bf16 %v2039_v3, %v2039_v3 }
  0x57   :  { %v566_v13 = vrot.slane %v552_v27, %v1940_v5  ;;  %v467_v30 = vsel %vm202_vm1, %v466_v39, %v465_v28  ;;  %v623_v37 = vrot.slane %v1749_v12, %v1940_v5  ;;  %v674_v62 = vrot.slane %v615_v11, %v1940_v5 }
  0x58   :  { %525 = vrot.lane.b32.xlu0 %v522_v40, %s1893_s28  ;;  %v469_v56 = vsel %vm205_vm2, %v468_v9, %v467_v30  ;;  %v856_v38 = vcombine.high %v615_v11, %v615_v11  ;;  %v631_v46 = vrot.slane %v1750_v42, %v1940_v5  ;;  %v639_v29 = vrot.slane %v1751_v22, %v1940_v5 }
  0x59   :  { %v471_v25 = vpack.c.b16 %v469_v56, %v469_v56  ;;  %v681_v45 = vrot.slane %v623_v37, %v1940_v5  ;;  %v2262_v1 = vunpack.c.l.b16 %v674_v62  ;;  %v857_v17 = vcombine.high %v623_v37, %v623_v37 }
  0x5a   :  { %v894_v3 = vrot.slane %v856_v38, %v1940_v5  ;;  %v1899_v31 = vmov 0   ;;  %569 = vrot.lane.b32.xlu1 %v566_v13, %s1892_s27  ;;  %v688_v19 = vrot.slane %v631_v46, %v1940_v5  ;;  %v695_v7 = vrot.slane %v639_v29, %v1940_v5  ;;  %s1915_s27 = smov 102  }
  0x5b   :  { %29 = vst [vmem:[#allocation2] sm:$0x3f] %v1899_v31  ;;  %30 = vst [vmem:[#allocation2 + $0x6] sm:$0x3f] %v1899_v31  ;;  %1491 = vmatprep.mubr.bf16.mxu0 %v1899_v31  ;;  %1532 = vmatprep.mubr.bf16.mxu1 %v1899_v31  ;;  %v485_v33 = vrot.slane %v471_v25, %v1940_v5  ;;  %v858_v35 = vcombine.high %v631_v46, %v631_v46  ;;  %v701_v36 = vunpack.c.l.b16 %v681_v45  ;;  %vm573_vm13 = vcmask 263304  }
  0x5c   :  { %31 = vst [vmem:[#allocation3] sm:$0xff] %v1899_v31  ;;  %32 = vst [vmem:[#allocation3 + $0x8] sm:$0xff] %v1899_v31  ;;  %451 = vrot.lane.b32.xlu0 %v448_v10, %s1891_s26  ;;  %v747_v20 = vrot.slane %v2262_v1, 1  ;;  %v859_v41 = vcombine.high %v639_v29, %v639_v29  ;;  %v901_v16 = vrot.slane %v857_v17, %v1940_v5  ;;  %v702_v32 = vunpack.c.l.b16 %v688_v19 }
  0x5d   :  { %33 = vst [vmem:[#allocation3 + $0x10] sm:$0xff] %v1899_v31  ;;  %34 = vst [vmem:[#allocation3 + $0x18] sm:$0xff] %v1899_v31  ;;  %v703_v34 = vunpack.c.l.b16 %v695_v7  ;;  %v908_v43 = vrot.slane %v858_v35, %v1940_v5  ;;  %v2292_v8 = vunpack.c.l.b16 %v894_v3  ;;  %1832 = vset.pattern.permute.xlu0 %v1899_v31  ;;  %v710_v47 = vrot.slane %v701_v36, 7 }
  0x5e   :  { %35 = vst [vmem:[#allocation3 + $0x20] sm:$0xff] %v1899_v31  ;;  %36 = vst [vmem:[#allocation3 + $0x28] sm:$0xff] %v1899_v31  ;;  %v748_v44 = vsel %vm199_vm0, %v701_v36, %v747_v20  ;;  %v915_v48 = vrot.slane %v859_v41, %v1940_v5  ;;  %v2297_v49 = vunpack.c.l.b16 %v901_v16  ;;  %v749_v50 = vrot.slane %v702_v32, 7 }
  0x5f   :  { %37 = vst [vmem:[#allocation3 + $0x30] sm:$0xff] %v1899_v31  ;;  %38 = vst [vmem:[#allocation3 + $0x38] sm:$0xff] %v1899_v31  ;;  %v751_v51 = vrot.slane %v703_v34, 6  ;;  %v712_v26 = vrot.slane %v702_v32, 6  ;;  %v714_v52 = vrot.slane %v703_v34, 5  ;;  %v711_v53 = vsel %vm199_vm0, %v710_v47, %v2262_v1 }
  0x60   :  { %39 = vst [vmem:[#allocation3 + $0x40] sm:$0xff] %v1899_v31  ;;  %40 = vst [vmem:[#allocation3 + $0x48] sm:$0xff] %v1899_v31  ;;  %488 = vrot.lane.b32.xlu0 %v485_v33, %s1894_s29  ;;  %v922_v54 = vunpack.c.l.b16 %v908_v43  ;;  %v923_v55 = vunpack.c.l.b16 %v915_v48  ;;  %v967_v14 = vrot.slane %v2292_v8, 1  ;;  %v750_v57 = vsel %vm202_vm1, %v749_v50, %v748_v44 }
  0x61   :  { %41 = vst [vmem:[#allocation3 + $0x50] sm:$0xff] %v1899_v31  ;;  %42 = vst [vmem:[#allocation3 + $0x58] sm:$0xff] %v1899_v31  ;;  %v713_v15 = vsel %vm202_vm1, %v712_v26, %v711_v53  ;;  %v784_v58 = vrot.slane %v2262_v1, 2  ;;  %v785_v59 = vrot.slane %v701_v36, 1  ;;  %v752_v60 = vsel %vm205_vm2, %v751_v51, %v750_v57 }
  0x62   :  { %43 = vst [vmem:[#allocation3 + $0x60] sm:$0x33] %v1899_v31  ;;  %44 = vst [vmem:[#allocation3 + $0x68] sm:$0x33] %v1899_v31  ;;  %v715_v61 = vsel %vm205_vm2, %v714_v52, %v713_v15  ;;  %v968_v63 = vsel %vm199_vm0, %v2297_v49, %v967_v14  ;;  %v969_v21 = vrot.slane %v922_v54, 7  ;;  %v754_v23 = vpack.c.b16 %v752_v60, %v752_v60 }
  0x63   :  { %45 = vst [vmem:[#allocation3 + $0x70] sm:$0x33] %v1899_v31  ;;  %v717_v0 = vpack.c.b16 %v715_v61, %v715_v61  ;;  %v971_v18 = vrot.slane %v923_v55, 6  ;;  %v786_v24 = vsel %vm199_vm0, %v785_v59, %v784_v58  ;;  %v788_v6 = vrot.slane %v703_v34, 7 }
  0x64   :  { %v970_v2 = vsel %vm202_vm1, %v969_v21, %v968_v63  ;;  %v787_v4 = vsel %vm202_vm1, %v702_v32, %v786_v24  ;;  %v821_v27 = vrot.slane %v2262_v1, 3  ;;  %v768_v28 = vrot.slane %v754_v23, %v1940_v5 }
  0x65   :  { %v731_v39 = vrot.slane %v717_v0, %v1940_v5  ;;  %v972_v9 = vsel %vm205_vm2, %v971_v18, %v970_v2  ;;  %v822_v40 = vrot.slane %v701_v36, 2  ;;  %v789_v11 = vsel %vm205_vm2, %v788_v6, %v787_v4 }
  0x66   :  { %v974_v10 = vpack.c.b16 %v972_v9, %v972_v9  ;;  %v824_v12 = vrot.slane %v702_v32, 1  ;;  %v930_v13 = vrot.slane %v2297_v49, 7  ;;  %771 = vrot.lane.b32.xlu1 %v768_v28, %s1887_s22  ;;  %v791_v30 = vpack.c.b16 %v789_v11, %v789_v11 }
  0x67   :  { %734 = vrot.lane.b32.xlu0 %v731_v39, %s1888_s23  ;;  %v823_v42 = vsel %vm199_vm0, %v822_v40, %v821_v27  ;;  %v932_v22 = vrot.slane %v922_v54, 6  ;;  %v934_v56 = vrot.slane %v923_v55, 5  ;;  %v1011_v25 = vrot.slane %v2292_v8, 2 }
  0x68   :  { %v988_v37 = vrot.slane %v974_v10, %v1940_v5  ;;  %v825_v62 = vsel %vm202_vm1, %v824_v12, %v823_v42  ;;  %v931_v38 = vsel %vm199_vm0, %v930_v13, %v2292_v8  ;;  %v805_v46 = vrot.slane %v791_v30, %v1940_v5 }
  0x69   :  { %v826_v29 = vsel %vm205_vm2, %v703_v34, %v825_v62  ;;  %v933_v45 = vsel %vm202_vm1, %v932_v22, %v931_v38  ;;  %v1012_v1 = vrot.slane %v2297_v49, 1  ;;  %v1015_v33 = vrot.slane %v923_v55, 7 }
  0x6a   :  { %v828_v17 = vpack.c.b16 %v826_v29, %v826_v29  ;;  %v935_v3 = vsel %vm205_vm2, %v934_v56, %v933_v45  ;;  %v1048_v19 = vrot.slane %v2292_v8, 3  ;;  %991 = vrot.lane.b32.xlu1 %v988_v37, %s1895_s30  ;;  %v1049_v36 = vrot.slane %v2297_v49, 2 }
  0x6b   :  { %808 = vrot.lane.b32.xlu0 %v805_v46, %s1890_s25  ;;  %v937_v7 = vpack.c.b16 %v935_v3, %v935_v3  ;;  %v1013_v35 = vsel %vm199_vm0, %v1012_v1, %v1011_v25  ;;  %v1051_v20 = vrot.slane %v922_v54, 1  ;;  %vm738_vm14 = vcmask 410904   ;;  %s1913_s25 = smov 106  }
  0x6c   :  { %v842_v41 = vrot.slane %v828_v17, %v1940_v5  ;;  %v1014_v16 = vsel %vm202_vm1, %v922_v54, %v1013_v35  ;;  %v1050_v43 = vsel %vm199_vm0, %v1049_v36, %v1048_v19  ;;  %vm775_vm15 = vcmask 558504  }
  0x6d   :  { %v951_v32 = vrot.slane %v937_v7, %v1940_v5  ;;  %v1016_v34 = vsel %vm205_vm2, %v1015_v33, %v1014_v16  ;;  %v1052_v44 = vsel %vm202_vm1, %v1051_v20, %v1050_v43  ;;  %vm812_vm0 = vcmask 706104  }
  0x6e   :  { %v1018_v8 = vpack.c.b16 %v1016_v34, %v1016_v34  ;;  %v1053_v47 = vsel %vm205_vm2, %v923_v55, %v1052_v44  ;;  %vm1000_vm1 = vcmask 1042408   ;;  %vm1001_vm2 = vcmask 101378  }
  0x6f   :  { %845 = vrot.lane.b32.xlu0 %v842_v41, %s1889_s24  ;;  %954 = vrot.lane.b32.xlu1 %v951_v32, %s1896_s4  ;;  %v1055_v49 = vpack.c.b16 %v1053_v47, %v1053_v47  ;;  %vm995_vm8 = vcmask 1022976   ;;  %vm958_vm9 = vcmask 1001304   ;;  %s1912_s24 = smov 114  }
  0x70   :  { %v1032_v48 = vrot.slane %v1018_v8, %v1940_v5 }
  0x71   :  { %v1069_v50 = vrot.slane %v1055_v49, %v1940_v5 }
  0x73   :  { %1035 = vrot.lane.b32.xlu0 %v1032_v48, %s1897_s5  ;;  %1072 = vrot.lane.b32.xlu1 %v1069_v50, %s1898_s6 }
  0x95   :  { %v304_v51 = vpop.permute.xlu1 %303 }
  0x96   :  { %v230_v26 = vpop.permute.xlu0 %229 }
  0x97   :  { %236 = vst.msk [vmem:[#allocation2] sm:$0x3] %vm235_vm3, %v230_v26 }
  0x99   :  { %v341_v52 = vpop.permute.xlu1 %340 }
  0x9a   :  { %v267_v53 = vpop.permute.xlu0 %266 }
  0x9b   :  { %273 = vst.msk [vmem:[#allocation2] sm:$0x3] %vm272_vm4, %v267_v53 }
  0x9c   :  { %310 = vst.msk [vmem:[#allocation2] sm:$0x3] %vm309_vm5, %v304_v51 }
  0x9d   :  { %347 = vst.msk [vmem:[#allocation2] sm:$0x3] %vm346_vm6, %v341_v52  ;;  %v770_v54 = vpop.permute.xlu1 %769 }
  0x9e   :  { %v733_v14 = vpop.permute.xlu0 %732 }
  0xa1   :  { %v844_v55 = vpop.permute.xlu1 %843 }
  0xa2   :  { %v807_v15 = vpop.permute.xlu0 %806 }
  0xa8   :  { %v450_v57 = vpop.permute.xlu1 %449 }
  0xa9   :  { %456 = vst.msk [vmem:[#allocation2] sm:$0x3] %vm455_vm7, %v450_v57 }
  0xad   :  { %v568_v59 = vpop.permute.xlu1 %567 }
  0xb0   :  { %v232_v58 = vpop.permute.xlu0 %231 }
  0xb1   :  { %237 = vst.msk [vmem:[#allocation2 + $0x6] sm:$0x3] %vm235_vm3, %v232_v58  ;;  %vm849_vm3 = vcmask 853704  }
  0xb4   :  { %v524_v60 = vpop.permute.xlu0 %523 }
  0xb5   :  { %v527_v61 = vrot.slane %v524_v60, 6 }
  0xb7   :  { %v530_v23 = vsel %vm529_vm10, %v527_v61, %v524_v60 }
  0xb8   :  { %v487_v21 = vpop.permute.xlu0 %486  ;;  %v990_v0 = vpop.permute.xlu1 %989 }
  0xb9   :  { %493 = vst.msk [vmem:[#allocation2] sm:$0x3] %vm2704_vm11, %v487_v21  ;;  %v993_v18 = vrot.slane %v990_v0, 6  ;;  %vm2369_vm11 = vmor %vm1001_vm2, %vm1000_vm1  ;;  %vm1076_vm1 = vcmask 394504   ;;  %vm1131_vm2 = vcmask 1031168  }
  0xba   :  { %537 = vst.msk [vmem:[#allocation2] sm:$0xf] %vm2356_vm12, %v530_v23 }
  0xbb   :  { %574 = vst.msk [vmem:[#allocation2 + $0x2] sm:$0x3] %vm573_vm13, %v568_v59  ;;  %v996_v6 = vsel %vm995_vm8, %v993_v18, %v990_v0 }
  0xbc   :  { %739 = vst.msk [vmem:[#allocation2 + $0x2] sm:$0x3] %vm738_vm14, %v733_v14  ;;  %v269_v24 = vpop.permute.xlu0 %268  ;;  %v953_v2 = vpop.permute.xlu1 %952 }
  0xbd   :  { %776 = vst.msk [vmem:[#allocation2 + $0x2] sm:$0x3] %vm775_vm15, %v770_v54 }
  0xbe   :  { %274 = vst.msk [vmem:[#allocation2 + $0x6] sm:$0x3] %vm272_vm4, %v269_v24  ;;  %vm1039_vm4 = vcmask 246904  }
  0xbf   :  { %813 = vst.msk [vmem:[#allocation2 + $0x2] sm:$0x3] %vm812_vm0, %v807_v15 }
  0xc0   :  { %850 = vst.msk [vmem:[#allocation2 + $0x2] sm:$0x3] %vm849_vm3, %v844_v55  ;;  %v306_v27 = vpop.permute.xlu0 %305  ;;  %v343_v28 = vpop.permute.xlu1 %342 }
  0xc1   :  { %959 = vst.msk [vmem:[#allocation2 + $0x2] sm:$0x3] %vm958_vm9, %v953_v2 }
  0xc2   :  { %311 = vst.msk [vmem:[#allocation2 + $0x6] sm:$0x3] %vm309_vm5, %v306_v27  ;;  %vm2709_vm5 = vcmask 1017704  }
  0xc3   :  { %1003 = vst.msk [vmem:[#allocation2 + $0x2] sm:$0xf] %vm2369_vm11, %v996_v6 }
  0xc4   :  { %348 = vst.msk [vmem:[#allocation2 + $0x6] sm:$0x3] %vm346_vm6, %v343_v28  ;;  %v1034_v39 = vpop.permute.xlu1 %1033  ;;  %vm1100_vm6 = vcmask 254976  }
  0xc5   :  { %1040 = vst.msk [vmem:[#allocation2 + $0x4] sm:$0x3] %vm1039_vm4, %v1034_v39 }
  0xc8   :  { %v1071_v9 = vpop.permute.xlu1 %1070 }
  0xc9   :  { %1077 = vst.msk [vmem:[#allocation2 + $0x4] sm:$0x3] %vm1076_vm1, %v1071_v9 }
  0xca   :  { %v526_v40 = vpop.permute.xlu0 %525 }
  0xcb   :  { %v528_v11 = vrot.slane %v526_v40, 6 }
  0xcc   :  { %v570_v56 = vpop.permute.xlu1 %569 }
  0xcd   :  { %v531_v22 = vsel %vm529_vm10, %v528_v11, %v526_v40 }
  0xce   :  { %v452_v10 = vpop.permute.xlu0 %451 }
  0xcf   :  { %457 = vst.msk [vmem:[#allocation2 + $0x6] sm:$0x3] %vm455_vm7, %v452_v10  ;;  %vm1122_vm7 = vcmask 257026  }
  0xd0   :  { %v1079_v12 = vld [vmem:[#allocation2] sm:$0x3f] }
  0xd1   :  { %v1089_v30 = vrot.slane %v1079_v12, %v1940_v5  ;;  %1752 = vst.sshfl [vmem:[#allocation3] sm:$0xf pattern:$0x76325410] %v1079_v12  ;;  %v1082_v42 = vcombine.high %v1079_v12, %v1079_v12  ;;  %v1102_v20 = vcombine.low %v1079_v12, %v1079_v12 }
  0xd2   :  { %v489_v13 = vpop.permute.xlu0 %488 }
  0xd3   :  { %494 = vst.msk [vmem:[#allocation2 + $0x6] sm:$0x3] %vm2709_vm5, %v489_v13  ;;  %1165 = vrot.lane.b32.xlu1 %v1089_v30, %s1900_s7  ;;  %1202 = vrot.lane.b32.xlu0 %v1089_v30, %s1901_s8  ;;  %v1096_v37 = vrot.slane %v1082_v42, %v1940_v5  ;;  %v1109_v41 = vrot.slane %v1102_v20, %v1940_v5  ;;  %vm1604_vm5 = vcmask 523648  }
  0xd4   :  { %538 = vst.msk [vmem:[#allocation2 + $0x6] sm:$0xf] %vm2356_vm12, %v531_v22  ;;  %vm1209_vm12 = vcmask 736256  }
  0xd5   :  { %575 = vst.msk [vmem:[#allocation2 + $0x8] sm:$0x3] %vm573_vm13, %v570_v56  ;;  %vm1170_vm13 = vcmask 883712  }
  0xd6   :  { %1101 = vst.msk [vmem:[#allocation3 + $0x8] sm:$0x3] %vm1100_vm6, %v1096_v37 }
  0xd7   :  { %1191 = vrot.lane.b32.xlu1 %v1089_v30, %s1891_s26  ;;  %1150 = vrot.lane.b32.xlu0 %v1089_v30, %s1894_s29 }
  0xd8   :  { %v772_v62 = vpop.permute.xlu1 %771 }
  0xd9   :  { %v735_v38 = vpop.permute.xlu0 %734 }
  0xda   :  { %740 = vst.msk [vmem:[#allocation2 + $0x8] sm:$0x3] %vm738_vm14, %v735_v38  ;;  %vm1157_vm14 = vcmask 891904  }
  0xdb   :  { %777 = vst.msk [vmem:[#allocation2 + $0x8] sm:$0x3] %vm775_vm15, %v772_v62  ;;  %1112 = vrot.lane.b32.xlu1 %v1089_v30, %s1893_s28  ;;  %1176 = vrot.lane.b32.xlu0 %v1089_v30, %s1902_s9  ;;  %vm1196_vm15 = vcmask 744448  }
  0xdc   :  { %v992_v25 = vpop.permute.xlu1 %991 }
  0xdd   :  { %v809_v46 = vpop.permute.xlu0 %808  ;;  %v994_v29 = vrot.slane %v992_v25, 6 }
  0xde   :  { %814 = vst.msk [vmem:[#allocation2 + $0x8] sm:$0x3] %vm812_vm0, %v809_v46  ;;  %vm1183_vm0 = vcmask 752640  }
  0xdf   :  { %1139 = vrot.lane.b32.xlu1 %v1089_v30, %s1903_s10  ;;  %1124 = vrot.lane.b32.xlu0 %v1089_v30, %s1904_s11  ;;  %v997_v17 = vsel %vm995_vm8, %v994_v29, %v992_v25  ;;  %vm1144_vm8 = vcmask 900096  }
  0xe1   :  { %v846_v45 = vpop.permute.xlu0 %845  ;;  %v955_v1 = vpop.permute.xlu1 %954 }
  0xe2   :  { %851 = vst.msk [vmem:[#allocation2 + $0x8] sm:$0x3] %vm849_vm3, %v846_v45  ;;  %vm1440_vm3 = vcmask 1041408  }
  0xe3   :  { %960 = vst.msk [vmem:[#allocation2 + $0x8] sm:$0x3] %vm958_vm9, %v955_v1  ;;  %vm1436_vm9 = vcmask 293888  }
  0xe4   :  { %1004 = vst.msk [vmem:[#allocation2 + $0x8] sm:$0xf] %vm2369_vm11, %v997_v17  ;;  %vm1116_vm11 = vcmask 1043456  }
  0xe5   :  { %v1036_v3 = vpop.permute.xlu0 %1035  ;;  %v1073_v33 = vpop.permute.xlu1 %1072 }
  0xe6   :  { %1041 = vst.msk [vmem:[#allocation2 + $0xa] sm:$0x3] %vm1039_vm4, %v1036_v3  ;;  %vm1594_vm4 = vcmask 261248  }
  0xe7   :  { %1078 = vst.msk [vmem:[#allocation2 + $0xa] sm:$0x3] %vm1076_vm1, %v1073_v33  ;;  %vm1599_vm1 = vcmask 392448  }
  0xee   :  { %v1080_v19 = vld [vmem:[#allocation2 + $0x6] sm:$0x3f] }
  0xef   :  { %v1223_v7 = vrot.slane %v1080_v19, %v1940_v5  ;;  %1753 = vst.sshfl [vmem:[#allocation3 + $0xc] sm:$0xf pattern:$0x76325410] %v1080_v19  ;;  %v1216_v35 = vcombine.high %v1080_v19, %v1080_v19  ;;  %v1235_v16 = vcombine.low %v1080_v19, %v1080_v19 }
  0xf1   :  { %1293 = vrot.lane.b32.xlu1 %v1223_v7, %s1900_s7  ;;  %1327 = vrot.lane.b32.xlu0 %v1223_v7, %s1901_s8  ;;  %v1230_v36 = vrot.slane %v1216_v35, %v1940_v5  ;;  %v1242_v32 = vrot.slane %v1235_v16, %v1940_v5  ;;  %v1355_v5 = vld [vmem:[%s2702_s2] sm:$0xff] }
  0xf3   :  { %1234 = vst.msk [vmem:[#allocation3 + $0x14] sm:$0x3] %vm1100_vm6, %v1230_v36 }
  0xf5   :  { %1317 = vrot.lane.b32.xlu1 %v1223_v7, %s1891_s26  ;;  %1279 = vrot.lane.b32.xlu0 %v1223_v7, %s1894_s29 }
  0xf9   :  { %1245 = vrot.lane.b32.xlu1 %v1223_v7, %s1893_s28  ;;  %1303 = vrot.lane.b32.xlu0 %v1223_v7, %s1902_s9 }
  0xfd   :  { %1255 = vrot.lane.b32.xlu0 %v1223_v7, %s1904_s11  ;;  %1204 = vrot.lane.b32.xlu1 %v1096_v37, %s1901_s8 }
 0x101   :  { %1163 = vrot.lane.b32.xlu0 %v1109_v41, %s1900_s7  ;;  %1152 = vrot.lane.b32.xlu1 %v1096_v37, %s1894_s29 }
 0x105   :  { %1189 = vrot.lane.b32.xlu0 %v1109_v41, %s1891_s26  ;;  %1178 = vrot.lane.b32.xlu1 %v1096_v37, %s1902_s9 }
 0x109   :  { %1110 = vrot.lane.b32.xlu0 %v1109_v41, %s1893_s28  ;;  %1126 = vrot.lane.b32.xlu1 %v1096_v37, %s1904_s11 }
 0x10d   :  { %1137 = vrot.lane.b32.xlu0 %v1109_v41, %s1903_s10  ;;  %1329 = vrot.lane.b32.xlu1 %v1230_v36, %s1901_s8 }
 0x111   :  { %1291 = vrot.lane.b32.xlu0 %v1242_v32, %s1900_s7  ;;  %1281 = vrot.lane.b32.xlu1 %v1230_v36, %s1894_s29 }
 0x115   :  { %1315 = vrot.lane.b32.xlu0 %v1242_v32, %s1891_s26  ;;  %1305 = vrot.lane.b32.xlu1 %v1230_v36, %s1902_s9  ;;  %s1914_s26 = smov 104  }
 0x119   :  { %1243 = vrot.lane.b32.xlu0 %v1242_v32, %s1893_s28  ;;  %1257 = vrot.lane.b32.xlu1 %v1230_v36, %s1904_s11  ;;  %s1916_s28 = smov 98  }
 0x11d   :  { %1267 = vrot.lane.b32.xlu0 %v1242_v32, %s1903_s10  ;;  %1269 = vrot.lane.b32.xlu1 %v1223_v7, %s1903_s10 }
 0x121   :  { %1358 = vperm.xlu0 %1832, %v1355_v5  }
 0x145   :  { %v1166_v34 = vpop.permute.xlu1 %1165  ;;  %v1203_v8 = vpop.permute.xlu0 %1202 }
 0x146   :  { %1175 = vst.msk [vmem:[#allocation3 + $0x38] sm:$0xc] %vm1122_vm7, %v1166_v34  ;;  %v1206_v15 = vrot.slane %v1203_v8, 4  ;;  %v1168_v21 = vrot.slane %v1166_v34, 4 }
 0x149   :  { %v1192_v43 = vpop.permute.xlu1 %1191  ;;  %v1151_v48 = vpop.permute.xlu0 %1150 }
 0x14a   :  { %1201 = vst.msk [vmem:[#allocation3 + $0x50] sm:$0xc] %vm1122_vm7, %v1192_v43  ;;  %v1154_v23 = vrot.slane %v1151_v48, 4  ;;  %v1194_v39 = vrot.slane %v1192_v43, 4 }
 0x14d   :  { %v2443_v44 = vpop.permute.xlu1 %1112  ;;  %v1177_v49 = vpop.permute.xlu0 %1176 }
 0x14e   :  { %1123 = vst.msk [vmem:[#allocation3 + $0x8] sm:$0xc] %vm1122_vm7, %v2443_v44  ;;  %v1180_v9 = vrot.slane %v1177_v49, 4  ;;  %v1115_v13 = vrot.slane %v2443_v44, 4 }
 0x151   :  { %v2447_v47 = vpop.permute.xlu1 %1139  ;;  %v2451_v50 = vpop.permute.xlu0 %1124 }
 0x152   :  { %1149 = vst.msk [vmem:[#allocation3 + $0x20] sm:$0xc] %vm1122_vm7, %v2447_v47  ;;  %v1128_v30 = vrot.slane %v2451_v50, 4  ;;  %v1142_v35 = vrot.slane %v2447_v47, 4 }
 0x163   :  { %v2453_v51 = vpop.permute.xlu1 %1293  ;;  %v2455_v26 = vpop.permute.xlu0 %1327 }
 0x164   :  { %1302 = vst.msk [vmem:[#allocation3 + $0x44] sm:$0xc] %vm1122_vm7, %v2453_v51  ;;  %v1331_v36 = vrot.slane %v2455_v26, 4 }
 0x167   :  { %v2459_v52 = vpop.permute.xlu1 %1317  ;;  %v2461_v53 = vpop.permute.xlu0 %1279 }
 0x168   :  { %1326 = vst.msk [vmem:[#allocation3 + $0x5c] sm:$0xc] %vm1122_vm7, %v2459_v52 }
 0x16b   :  { %v2465_v54 = vpop.permute.xlu1 %1245  ;;  %v2467_v55 = vpop.permute.xlu0 %1303 }
 0x16c   :  { %1254 = vst.msk [vmem:[#allocation3 + $0x14] sm:$0xc] %vm1122_vm7, %v2465_v54 }
 0x16f   :  { %v2471_v14 = vpop.permute.xlu0 %1255  ;;  %v1205_v57 = vpop.permute.xlu1 %1204 }
 0x170   :  { %v1207_v58 = vrot.slane %v1205_v57, 4  ;;  %1214 = vst.msk [vmem:[#allocation3 + $0x68] sm:$0x3] %vm1100_vm6, %v1205_v57 }
 0x172   :  { %v1208_v59 = vsel %vm1116_vm11, %v1206_v15, %v1207_v58 }
 0x173   :  { %v1210_v60 = vsel %vm1209_vm12, %v1203_v8, %v1208_v59  ;;  %v1164_v61 = vpop.permute.xlu0 %1163  ;;  %v1153_v63 = vpop.permute.xlu1 %1152 }
 0x174   :  { %1213 = vst [vmem:[#allocation3 + $0x60] sm:$0x33] %v1210_v60  ;;  %v1167_v0 = vrot.slane %v1164_v61, 4  ;;  %v1155_v18 = vrot.slane %v1153_v63, 4  ;;  %1162 = vst.msk [vmem:[#allocation3 + $0x38] sm:$0x3] %vm1100_vm6, %v1153_v63 }
 0x175   :  { %v1307_v63 = vrot.slane %v2467_v55, 4 }
 0x176   :  { %v1169_v24 = vsel %vm1116_vm11, %v1167_v0, %v1168_v21  ;;  %v1156_v2 = vsel %vm1116_vm11, %v1154_v23, %v1155_v18  ;;  %v1248_v0 = vrot.slane %v2465_v54, 4 }
 0x177   :  { %v1171_v4 = vsel %vm1170_vm13, %v1164_v61, %v1169_v24  ;;  %v1158_v6 = vsel %vm1157_vm14, %v1151_v48, %v1156_v2  ;;  %v1190_v27 = vpop.permute.xlu0 %1189  ;;  %v1179_v28 = vpop.permute.xlu1 %1178  ;;  %v1296_v48 = vrot.slane %v2453_v51, 4  ;;  %v1320_v61 = vrot.slane %v2459_v52, 4 }
 0x178   :  { %1174 = vst [vmem:[#allocation3 + $0x30] sm:$0xcc] %v1171_v4  ;;  %1161 = vst [vmem:[#allocation3 + $0x30] sm:$0x33] %v1158_v6  ;;  %v1193_v40 = vrot.slane %v1190_v27, 4  ;;  %v1181_v10 = vrot.slane %v1179_v28, 4 }
 0x179   :  { %1188 = vst.msk [vmem:[#allocation3 + $0x50] sm:$0x3] %vm1100_vm6, %v1179_v28 }
 0x17a   :  { %v1195_v11 = vsel %vm1116_vm11, %v1193_v40, %v1194_v39  ;;  %v1182_v12 = vsel %vm1116_vm11, %v1180_v9, %v1181_v10 }
 0x17b   :  { %v1197_v42 = vsel %vm1196_vm15, %v1190_v27, %v1195_v11  ;;  %v1184_v22 = vsel %vm1183_vm0, %v1177_v49, %v1182_v12  ;;  %v1111_v56 = vpop.permute.xlu0 %1110  ;;  %v1127_v37 = vpop.permute.xlu1 %1126  ;;  %v1352_v62 = vld [vmem:[#allocation3 + $0x60] sm:$0x33]  ;;  %v1283_v49 = vrot.slane %v2461_v53, 4 }
 0x17c   :  { %1200 = vst [vmem:[#allocation3 + $0x48] sm:$0xcc] %v1197_v42  ;;  %1187 = vst [vmem:[#allocation3 + $0x48] sm:$0x33] %v1184_v22  ;;  %v1114_v38 = vrot.slane %v1111_v56, 4  ;;  %v1129_v25 = vrot.slane %v1127_v37, 4  ;;  %v1767_v46 = vcombine.high %v1352_v62, %v1352_v62  ;;  %v1766_v29 = vcombine.low %v1352_v62, %v1352_v62 }
 0x17d   :  { %1136 = vst.msk [vmem:[#allocation3 + $0x20] sm:$0x3] %vm1100_vm6, %v1127_v37  ;;  %v1339_v22 = vld [vmem:[%s2701_s1] sm:$0xf]  ;;  %s1905_s1 = smov 122  }
 0x17e   :  { %v1117_v45 = vsel %vm1116_vm11, %v1114_v38, %v1115_v13  ;;  %v1130_v1 = vsel %vm1116_vm11, %v1128_v30, %v1129_v25  ;;  %1772 = vmatprep.subr.msk.bf16.mxu0 %vm1440_vm3, %v1767_v46  ;;  %v1442_v17 = vsel %vm1440_vm3, %v1766_v29, 0 }
 0x17f   :  { %v1118_v3 = vsel %vm529_vm10, %v1111_v56, %v1117_v45  ;;  %v1132_v33 = vsel %vm1131_vm2, %v2451_v50, %v1130_v1  ;;  %v1138_v19 = vpop.permute.xlu0 %1137  ;;  %1470 = vmatpush1.bf16.msra.mxu0 %v1442_v17  ;;  %v1330_v7 = vpop.permute.xlu1 %1329 }
 0x180   :  { %1121 = vst [vmem:[#allocation3] sm:$0xcc] %v1118_v3  ;;  %1135 = vst [vmem:[#allocation3 + $0x18] sm:$0x33] %v1132_v33  ;;  %v1141_v20 = vrot.slane %v1138_v19, 4  ;;  %v1332_v41 = vrot.slane %v1330_v7, 4 }
 0x181   :  { %1338 = vst.msk [vmem:[#allocation3 + $0x74] sm:$0x3] %vm1100_vm6, %v1330_v7  ;;  %v1850_v33 = vld [vmem:[#allocation3 + $0x38] ss:$24 sps:$4 sm:$0xff]  }
 0x182   :  { %v1143_v16 = vsel %vm1116_vm11, %v1141_v20, %v1142_v35  ;;  %v1333_v32 = vsel %vm1116_vm11, %v1331_v36, %v1332_v41 }
 0x183   :  { %v1145_v5 = vsel %vm1144_vm8, %v1138_v19, %v1143_v16  ;;  %v1334_v34 = vsel %vm1209_vm12, %v2455_v26, %v1333_v32  ;;  %v1292_v43 = vpop.permute.xlu0 %1291  ;;  %v1282_v8 = vpop.permute.xlu1 %1281  ;;  %v1835_v44 = vld [vmem:[#allocation3 + $0x34] ss:$24 sps:$4 sm:$0xff]   ;;  %v1837_v47 = vld [vmem:[#allocation3 + $0x30] ss:$24 sps:$4 sm:$0xff]   ;;  %vm1660_vm12 = vcmask 818176  }
 0x184   :  { %1148 = vst [vmem:[#allocation3 + $0x18] sm:$0xcc] %v1145_v5  ;;  %1337 = vst [vmem:[#allocation3 + $0x6c] sm:$0x33] %v1334_v34  ;;  %v1295_v50 = vrot.slane %v1292_v43, 4  ;;  %v1284_v57 = vrot.slane %v1282_v8, 4  ;;  %1471 = vmatprep.subr.bf16.mxu0 %v1835_v44 }
 0x185   :  { %1290 = vst.msk [vmem:[#allocation3 + $0x44] sm:$0x3] %vm1100_vm6, %v1282_v8  ;;  %1472 = vmatpush1.bf16.msra.mxu0 %v1837_v47  ;;  %v1856_v36 = vld [vmem:[#allocation3 + $0x8] ss:$24 sps:$4 sm:$0xff]  }
 0x186   :  { %v1297_v15 = vsel %vm1116_vm11, %v1295_v50, %v1296_v48  ;;  %v1285_v58 = vsel %vm1116_vm11, %v1283_v49, %v1284_v57 }
 0x187   :  { %v1298_v26 = vsel %vm1170_vm13, %v1292_v43, %v1297_v15  ;;  %v1286_v59 = vsel %vm1157_vm14, %v2461_v53, %v1285_v58  ;;  %v1316_v51 = vpop.permute.xlu0 %1315  ;;  %v1306_v60 = vpop.permute.xlu1 %1305  ;;  %v1259_v53 = vrot.slane %v2471_v14, 4  ;;  %vm1626_vm13 = vcmask 932864  }
 0x188   :  { %1301 = vst [vmem:[#allocation3 + $0x3c] sm:$0xcc] %v1298_v26  ;;  %1289 = vst [vmem:[#allocation3 + $0x3c] sm:$0x33] %v1286_v59  ;;  %v1319_v21 = vrot.slane %v1316_v51, 4  ;;  %v1308_v23 = vrot.slane %v1306_v60, 4 }
 0x189   :  { %1314 = vst.msk [vmem:[#allocation3 + $0x5c] sm:$0x3] %vm1100_vm6, %v1306_v60  ;;  %vm1629_vm14 = vcmask 1048448  }
 0x18a   :  { %v1321_v18 = vsel %vm1116_vm11, %v1319_v21, %v1320_v61  ;;  %v1309_v24 = vsel %vm1116_vm11, %v1307_v63, %v1308_v23 }
 0x18b   :  { %v1322_v2 = vsel %vm1196_vm15, %v1316_v51, %v1321_v18  ;;  %v1310_v52 = vsel %vm1183_vm0, %v2467_v55, %v1309_v24  ;;  %v1244_v4 = vpop.permute.xlu0 %1243  ;;  %v1258_v6 = vpop.permute.xlu1 %1257  ;;  %v1838_v27 = vld [vmem:[#allocation3 + $0x4] ss:$24 sps:$4 sm:$0xff]   ;;  %v1353_v28 = vld [vmem:[#allocation3 + $0x68] sm:$0x33]  ;;  %v1841_v40 = vld [vmem:[#allocation3] ss:$24 sps:$4 sm:$0xff]  }
 0x18c   :  { %1325 = vst [vmem:[#allocation3 + $0x54] sm:$0xcc] %v1322_v2  ;;  %1313 = vst [vmem:[#allocation3 + $0x54] sm:$0x33] %v1310_v52  ;;  %v1247_v39 = vrot.slane %v1244_v4, 4  ;;  %v1260_v9 = vrot.slane %v1258_v6, 4  ;;  %v1769_v54 = vcombine.high %v1353_v28, %v1353_v28  ;;  %v1768_v10 = vcombine.low %v1353_v28, %v1353_v28  ;;  %1473 = vmatprep.subr.bf16.mxu0 %v1838_v27 }
 0x18d   :  { %1266 = vst.msk [vmem:[#allocation3 + $0x2c] sm:$0x3] %vm1100_vm6, %v1258_v6  ;;  %v1354_v11 = vld [vmem:[#allocation3 + $0x70] sm:$0x33]  ;;  %1474 = vmatpush1.bf16.msra.mxu0 %v1841_v40  ;;  %vm1609_vm6 = vcmask 654848  }
 0x18e   :  { %v1771_v12 = vcombine.high %v1354_v11, %v1354_v11  ;;  %v1770_v13 = vcombine.low %v1354_v11, %v1354_v11  ;;  %v1249_v30 = vsel %vm1116_vm11, %v1247_v39, %v1248_v0  ;;  %v1261_v55 = vsel %vm1116_vm11, %v1259_v53, %v1260_v9  ;;  %1774 = vmatprep.subr.msk.bf16.mxu1 %vm1440_vm3, %v1769_v54 }
 0x18f   :  { %v1448_v42 = vsel %vm1440_vm3, %v1768_v10, 0  ;;  %v1250_v56 = vsel %vm529_vm10, %v1244_v4, %v1249_v30  ;;  %v1262_v37 = vsel %vm1131_vm2, %v2471_v14, %v1261_v55  ;;  %v1268_v62 = vpop.permute.xlu0 %1267  ;;  %v1270_v38 = vpop.permute.xlu1 %1269  ;;  %vm1588_vm10 = vcmask 130048  }
 0x190   :  { %1511 = vmatpush1.bf16.msra.mxu1 %v1448_v42  ;;  %1776 = vmatprep.subr.msk.bf16.mxu0 %vm1440_vm3, %v1771_v12  ;;  %1253 = vst [vmem:[#allocation3 + $0xc] sm:$0xcc] %v1250_v56  ;;  %1265 = vst [vmem:[#allocation3 + $0x24] sm:$0x33] %v1262_v37  ;;  %v1271_v25 = vrot.slane %v1268_v62, 4  ;;  %v1272_v46 = vrot.slane %v1270_v38, 4 }
 0x191   :  { %1278 = vst.msk [vmem:[#allocation3 + $0x2c] sm:$0xc] %vm1122_vm7, %v1270_v38  ;;  %1773 = vmatmul.mubr.msk.bf16.vlgmr.msra.gmra.mxu0 %vm1436_vm9, %v1339_v22  ;;  %v1454_v29 = vsel %vm1440_vm3, %v1770_v13, 0  ;;  %v1849_v3 = vld [vmem:[#allocation3 + $0x44] ss:$24 sps:$4 sm:$0xff]   ;;  %vm1614_vm7 = vcmask 786048  }
 0x192   :  { %v1273_v45 = vsel %vm1116_vm11, %v1271_v25, %v1272_v46  ;;  %1552 = vmatpush1.bf16.msra.mxu0 %v1454_v29  ;;  %1573 = vmatprep.mubr.bf16.mxu0 %v1899_v31  ;;  %vm1619_vm11 = vcmask 917248  }
 0x193   :  { %v1274_v14 = vsel %vm1144_vm8, %v1268_v62, %v1273_v45  ;;  %v1845_v1 = vld [vmem:[#allocation3 + $0x3c] ss:$24 sps:$4 sm:$0xff]   ;;  %v1847_v17 = vld [vmem:[#allocation3 + $0x40] ss:$24 sps:$4 sm:$0xff]   ;;  %1553 = vmatprep.subr.bf16.mxu0 %v1849_v3 }
 0x194   :  { %1277 = vst [vmem:[#allocation3 + $0x24] sm:$0xcc] %v1274_v14  ;;  %1512 = vmatprep.subr.bf16.mxu1 %v1845_v1 }
 0x195   :  { %1513 = vmatpush1.bf16.msra.mxu1 %v1850_v33 }
 0x196   :  { %1554 = vmatpush1.bf16.msra.mxu0 %v1847_v17 }
 0x198   :  { %v1855_v35 = vld [vmem:[#allocation3 + $0x14] ss:$24 sps:$4 sm:$0xff]  }
 0x199   :  { %1555 = vmatprep.subr.bf16.mxu0 %v1855_v35 }
 0x19b   :  { %v1851_v19 = vld [vmem:[#allocation3 + $0xc] ss:$24 sps:$4 sm:$0xff]   ;;  %v1853_v7 = vld [vmem:[#allocation3 + $0x10] ss:$24 sps:$4 sm:$0xff]  }
 0x19c   :  { %1514 = vmatprep.subr.bf16.mxu1 %v1851_v19  ;;  %1556 = vmatpush1.bf16.msra.mxu0 %v1853_v7  ;;  %v2542_v31 = vpop.permute.xlu0 %1358 }
 0x19d   :  { %1515 = vmatpush1.bf16.msra.mxu1 %v1856_v36 }
 0x19f   :  { %1777 = vmatmul.mubr.msk.bf16.vlgmr.msra.gmra.mxu0 %vm1436_vm9, %v1339_v22 }
 0x1a0   :  { %1775 = vmatmul.mubr.msk.bf16.vlgmr.msra.gmra.mxu1 %vm1436_vm9, %v1339_v22 }
 0x251   :  { %v1493_v20 = vpop.f32.mrf.mxu0 }
 0x252   :  { %v1494_v41 = vadd.f32 %v1493_v20, %v2542_v31 }
 0x253   :  { %v1495_v16 = vpop.f32.mrf.mxu0 }
 0x254   :  { %v1582_v32 = vmax.f32 %v1494_v41, 0.0  ;;  %v1496_v43 = vadd.f32 %v1495_v16, %v2542_v31 }
 0x255   :  { %v1497_v5 = vpop.f32.mrf.mxu0 }
 0x256   :  { %1601 = vrot.lane.b32.xlu0 %v1582_v32, %s1905_s1  ;;  %1591 = vrot.lane.b32.xlu1 %v1582_v32, %s1904_s11  ;;  %1589 = vst.msk [vmem:[%s2703_s3] sm:$0xff] %vm1588_vm10, %v1582_v32  ;;  %v1583_v49 = vmax.f32 %v1496_v43, 0.0 }
 0x257   :  { %v1498_v34 = vpop.f32.mrf.mxu0 }
 0x25a   :  { %1606 = vrot.lane.b32.xlu0 %v1582_v32, %s1906_s17  ;;  %1596 = vrot.lane.b32.xlu1 %v1582_v32, %s1907_s18 }
 0x25e   :  { %1611 = vrot.lane.b32.xlu0 %v1582_v32, %s1908_s0 }
 0x25f   :  { %v1575_v47 = vpop.f32.mrf.mxu0 }
 0x260   :  { %v1534_v8 = vpop.f32.mrf.mxu1  ;;  %v1576_v61 = vadd.f32 %v1575_v47, %v2542_v31 }
 0x261   :  { %v1535_v44 = vadd.f32 %v1534_v8, %v2542_v31  ;;  %v1577_v15 = vpop.f32.mrf.mxu0 }
 0x262   :  { %1616 = vrot.lane.b32.xlu0 %v1582_v32, %s1909_s19  ;;  %v1536_v48 = vpop.f32.mrf.mxu1  ;;  %v1586_v63 = vmax.f32 %v1576_v61, 0.0  ;;  %v1578_v21 = vadd.f32 %v1577_v15, %v2542_v31 }
 0x263   :  { %v1584_v50 = vmax.f32 %v1535_v44, 0.0  ;;  %v1537_v57 = vadd.f32 %v1536_v48, %v2542_v31  ;;  %v1579_v59 = vpop.f32.mrf.mxu0 }
 0x264   :  { %v1538_v58 = vpop.f32.mrf.mxu1  ;;  %v1587_v23 = vmax.f32 %v1578_v21, 0.0 }
 0x265   :  { %v1585_v26 = vmax.f32 %v1537_v57, 0.0  ;;  %1658 = vrot.lane.b32.xlu1 %v1584_v50, %s1911_s21  ;;  %v1580_v60 = vpop.f32.mrf.mxu0 }
 0x266   :  { %1631 = vrot.lane.b32.xlu0 %v1583_v49, %s1910_s20  ;;  %v1539_v51 = vpop.f32.mrf.mxu1 }
 0x267   :  { %1778 = vst.msk [vmem:[%s2703_s3 + $0x10] sm:$0xff] %vm1588_vm10, %v1585_v26 }
 0x269   :  { %1622 = vrot.lane.b32.xlu1 %v1582_v32, %s1912_s24 }
 0x26a   :  { %1635 = vrot.lane.b32.xlu0 %v1583_v49, %s1903_s10 }
 0x26d   :  { %1671 = vrot.lane.b32.xlu1 %v1585_v26, %s1904_s11 }
 0x26e   :  { %1675 = vrot.lane.b32.xlu0 %v1585_v26, %s1907_s18 }
 0x271   :  { %1639 = vrot.lane.b32.xlu1 %v1583_v49, %s1900_s7 }
 0x272   :  { %1679 = vrot.lane.b32.xlu0 %v1585_v26, %s1905_s1 }
 0x275   :  { %1643 = vrot.lane.b32.xlu1 %v1583_v49, %s1913_s25 }
 0x276   :  { %1683 = vrot.lane.b32.xlu0 %v1585_v26, %s1906_s17 }
 0x279   :  { %1647 = vrot.lane.b32.xlu1 %v1583_v49, %s1914_s26 }
 0x27a   :  { %1656 = vrot.lane.b32.xlu0 %v1583_v49, %s1911_s21 }
 0x27d   :  { %1651 = vrot.lane.b32.xlu1 %v1583_v49, %s1915_s27 }
 0x27e   :  { %1687 = vrot.lane.b32.xlu0 %v1585_v26, %s1908_s0 }
 0x281   :  { %1691 = vrot.lane.b32.xlu1 %v1585_v26, %s1909_s19 }
 0x282   :  { %1624 = vrot.lane.b32.xlu0 %v1583_v49, %s1912_s24 }
 0x285   :  { %1703 = vrot.lane.b32.xlu1 %v1586_v63, %s1910_s20 }
 0x286   :  { %1696 = vrot.lane.b32.xlu0 %v1585_v26, %s1912_s24 }
 0x289   :  { %1711 = vrot.lane.b32.xlu1 %v1586_v63, %s1900_s7 }
 0x28a   :  { %1707 = vrot.lane.b32.xlu0 %v1586_v63, %s1903_s10 }
 0x28d   :  { %1715 = vrot.lane.b32.xlu1 %v1586_v63, %s1913_s25 }
 0x28e   :  { %1728 = vrot.lane.b32.xlu0 %v1586_v63, %s1911_s21 }
 0x291   :  { %1719 = vrot.lane.b32.xlu1 %v1586_v63, %s1914_s26 }
 0x292   :  { %1664 = vrot.lane.b32.xlu0 %v1584_v50, %s1916_s28 }
 0x295   :  { %1723 = vrot.lane.b32.xlu1 %v1586_v63, %s1915_s27 }
 0x299   :  { %1698 = vrot.lane.b32.xlu1 %v1586_v63, %s1912_s24 }
 0x29d   :  { %1730 = vrot.lane.b32.xlu1 %v1587_v23, %s1911_s21 }
 0x2a1   :  { %1735 = vrot.lane.b32.xlu1 %v1587_v23, %s1916_s28 }
 0x2c8   :  { %v1602_v0 = vpop.permute.xlu0 %1601  ;;  %v1592_v18 = vpop.permute.xlu1 %1591 }
 0x2c9   :  { %1595 = vst.msk [vmem:[%s2703_s3] sm:$0xff] %vm1594_vm4, %v1592_v18 }
 0x2cc   :  { %v1607_v24 = vpop.permute.xlu0 %1606  ;;  %v1597_v53 = vpop.permute.xlu1 %1596 }
 0x2cd   :  { %1600 = vst.msk [vmem:[%s2703_s3] sm:$0xff] %vm1599_vm1, %v1597_v53 }
 0x2ce   :  { %1605 = vst.msk [vmem:[%s2703_s3] sm:$0xff] %vm1604_vm5, %v1602_v0 }
 0x2cf   :  { %1610 = vst.msk [vmem:[%s2703_s3] sm:$0xff] %vm1609_vm6, %v1607_v24 }
 0x2d0   :  { %v1612_v2 = vpop.permute.xlu0 %1611 }
 0x2d1   :  { %1615 = vst.msk [vmem:[%s2703_s3] sm:$0xff] %vm1614_vm7, %v1612_v2 }
 0x2d4   :  { %v1617_v52 = vpop.permute.xlu0 %1616 }
 0x2d5   :  { %1620 = vst.msk [vmem:[%s2703_s3] sm:$0xff] %vm1619_vm11, %v1617_v52 }
 0x2d7   :  { %v1659_v6 = vpop.permute.xlu1 %1658 }
 0x2d8   :  { %v1632_v4 = vpop.permute.xlu0 %1631 }
 0x2d9   :  { %1634 = vst.msk [vmem:[%s2703_s3 + $0x8] sm:$0xff] %vm1588_vm10, %v1632_v4 }
 0x2db   :  { %v1623_v28 = vpop.permute.xlu1 %1622 }
 0x2dc   :  { %v1636_v27 = vpop.permute.xlu0 %1635 }
 0x2dd   :  { %1638 = vst.msk [vmem:[%s2703_s3 + $0x8] sm:$0xff] %vm1594_vm4, %v1636_v27 }
 0x2df   :  { %v1672_v9 = vpop.permute.xlu1 %1671 }
 0x2e0   :  { %v1676_v39 = vpop.permute.xlu0 %1675  ;;  %1779 = vst.msk [vmem:[%s2703_s3 + $0x10] sm:$0xff] %vm1594_vm4, %v1672_v9 }
 0x2e1   :  { %1780 = vst.msk [vmem:[%s2703_s3 + $0x10] sm:$0xff] %vm1599_vm1, %v1676_v39 }
 0x2e3   :  { %v1640_v40 = vpop.permute.xlu1 %1639 }
 0x2e4   :  { %v1680_v54 = vpop.permute.xlu0 %1679  ;;  %1642 = vst.msk [vmem:[%s2703_s3 + $0x8] sm:$0xff] %vm1599_vm1, %v1640_v40 }
 0x2e5   :  { %1781 = vst.msk [vmem:[%s2703_s3 + $0x10] sm:$0xff] %vm1604_vm5, %v1680_v54 }
 0x2e7   :  { %v1644_v11 = vpop.permute.xlu1 %1643 }
 0x2e8   :  { %v1684_v10 = vpop.permute.xlu0 %1683  ;;  %1646 = vst.msk [vmem:[%s2703_s3 + $0x8] sm:$0xff] %vm1604_vm5, %v1644_v11 }
 0x2e9   :  { %1782 = vst.msk [vmem:[%s2703_s3 + $0x10] sm:$0xff] %vm1609_vm6, %v1684_v10 }
 0x2eb   :  { %v1648_v13 = vpop.permute.xlu1 %1647 }
 0x2ec   :  { %v1657_v12 = vpop.permute.xlu0 %1656  ;;  %1650 = vst.msk [vmem:[%s2703_s3 + $0x8] sm:$0xff] %vm1609_vm6, %v1648_v13 }
 0x2ed   :  { %v1661_v42 = vsel %vm1660_vm12, %v1657_v12, %v1659_v6 }
 0x2ef   :  { %v1652_v55 = vpop.permute.xlu1 %1651 }
 0x2f0   :  { %v1688_v30 = vpop.permute.xlu0 %1687  ;;  %1654 = vst.msk [vmem:[%s2703_s3 + $0x8] sm:$0xff] %vm1614_vm7, %v1652_v55 }
 0x2f1   :  { %1783 = vst.msk [vmem:[%s2703_s3 + $0x10] sm:$0xff] %vm1614_vm7, %v1688_v30 }
 0x2f2   :  { %1663 = vst.msk [vmem:[%s2703_s3 + $0x8] sm:$0xff] %vm1619_vm11, %v1661_v42 }
 0x2f3   :  { %v1692_v56 = vpop.permute.xlu1 %1691 }
 0x2f4   :  { %v1625_v22 = vpop.permute.xlu0 %1624  ;;  %1784 = vst.msk [vmem:[%s2703_s3 + $0x10] sm:$0xff] %vm1619_vm11, %v1692_v56 }
 0x2f5   :  { %v1627_v37 = vsel %vm1626_vm13, %v1623_v28, %v1625_v22 }
 0x2f6   :  { %1630 = vst.msk [vmem:[%s2703_s3] sm:$0xff] %vm1629_vm14, %v1627_v37 }
 0x2f7   :  { %v1704_v38 = vpop.permute.xlu1 %1703 }
 0x2f8   :  { %v1697_v62 = vpop.permute.xlu0 %1696  ;;  %1786 = vst.msk [vmem:[%s2703_s3 + $0x18] sm:$0xff] %vm1588_vm10, %v1704_v38 }
 0x2fb   :  { %v1712_v46 = vpop.permute.xlu1 %1711 }
 0x2fc   :  { %v1708_v25 = vpop.permute.xlu0 %1707 }
 0x2fd   :  { %1787 = vst.msk [vmem:[%s2703_s3 + $0x18] sm:$0xff] %vm1594_vm4, %v1708_v25 }
 0x2fe   :  { %1788 = vst.msk [vmem:[%s2703_s3 + $0x18] sm:$0xff] %vm1599_vm1, %v1712_v46 }
 0x2ff   :  { %v1716_v45 = vpop.permute.xlu1 %1715 }
 0x300   :  { %v1729_v29 = vpop.permute.xlu0 %1728  ;;  %1789 = vst.msk [vmem:[%s2703_s3 + $0x18] sm:$0xff] %vm1604_vm5, %v1716_v45 }
 0x303   :  { %v1720_v1 = vpop.permute.xlu1 %1719 }
 0x304   :  { %v1665_v14 = vpop.permute.xlu0 %1664  ;;  %1790 = vst.msk [vmem:[%s2703_s3 + $0x18] sm:$0xff] %vm1609_vm6, %v1720_v1 }
 0x305   :  { %1667 = vst.msk [vmem:[%s2703_s3 + $0x8] sm:$0xff] %vm1629_vm14, %v1665_v14 }
 0x307   :  { %v1724_v17 = vpop.permute.xlu1 %1723 }
 0x308   :  { %1791 = vst.msk [vmem:[%s2703_s3 + $0x18] sm:$0xff] %vm1614_vm7, %v1724_v17 }
 0x30b   :  { %v1699_v3 = vpop.permute.xlu1 %1698 }
 0x30c   :  { %v1700_v33 = vsel %vm1626_vm13, %v1697_v62, %v1699_v3 }
 0x30d   :  { %1785 = vst.msk [vmem:[%s2703_s3 + $0x10] sm:$0xff] %vm1629_vm14, %v1700_v33 }
 0x30f   :  { %v1731_v19 = vpop.permute.xlu1 %1730 }
 0x310   :  { %v1732_v7 = vsel %vm1660_vm12, %v1729_v29, %v1731_v19 }
 0x311   :  { %1792 = vst.msk [vmem:[%s2703_s3 + $0x18] sm:$0xff] %vm1619_vm11, %v1732_v7 }
 0x313   :  { %v1736_v35 = vpop.permute.xlu1 %1735 }
 0x314   :  { %1793 = vst.msk [vmem:[%s2703_s3 + $0x18] sm:$0xff] %vm1629_vm14, %v1736_v35 }
 0x315   :  { %1743 = vsyncpa [#allocation5], 1 }

</bundles_post_ra>
